<compile_context>
chip_gen: v5e
topology: v5e:2x2
jax: 0.10.0
libtpu: 0.0.40
codegen_flags: <defaults>
</compile_context>

<pallas_src>
import jax
import jax.numpy as jnp
from jax import lax
from jax.experimental import pallas as pl
from jax.experimental.pallas import tpu as pltpu

# Logical sizes implied by the forward pass.
B = 2      # batch
LQ = 8     # question length
LA = 8     # answer length
T = 8      # target length (decode steps)
E = 32     # embedding dim
H = 32     # hidden dim
V = 16     # vocab size

# TPU-friendly padded sizes.
BP = 8       # batch padded to a full sublane group
VP = 128     # vocab padded to a full lane group (lane-dense logits / one-hot)


# ---------------------------------------------------------------------------
# Fused kernel: encoder + full greedy decode loop in a single invocation.
# ---------------------------------------------------------------------------
def _fused_kernel(q_ids_ref, a_ids_ref, t0_ref,
                  enc_q_ref, enc_a_ref, b_enc_ref,
                  tok_gates_ref, w_gh_ref, b_gru_ref,
                  w_out_ref, b_out_ref, o_ref):
    f32 = jnp.float32
    bf16 = jnp.bfloat16

    lane = lax.broadcasted_iota(jnp.int32, (BP, VP), 1)          # (BP, VP)

    # ---- Encoder: in-kernel "gather" as one-hot token counts; mean-pool and
    # the embedding matmul are folded into the prepared (VP, H) tables.
    def token_counts(ids, L):
        cnt = jnp.zeros((BP, VP), f32)
        for l in range(L):                                       # tiny, one-time
            cnt = cnt + (lane == ids[:, l:l + 1]).astype(f32)
        return cnt

    q_cnt = token_counts(q_ids_ref[...], LQ).astype(bf16)        # (BP, VP)
    a_cnt = token_counts(a_ids_ref[...], LA).astype(bf16)        # (BP, VP)
    h0 = jnp.tanh(
        jnp.dot(q_cnt, enc_q_ref[...], preferred_element_type=f32)
        + jnp.dot(a_cnt, enc_a_ref[...], preferred_element_type=f32)
        + b_enc_ref[...])                                        # (BP, H) f32

    tok_gates = tok_gates_ref[...]                               # (VP, 4H) bf16
    w_gh = w_gh_ref[...]                                         # (H, 4H) bf16
    b_gru = b_gru_ref[...]                                       # (1, 4H) f32
    w_out = w_out_ref[...]                                       # (H, VP) bf16
    b_out = b_out_ref[...]                                       # (1, VP) f32

    # First decoder input = embedding of target[:, 0]; only its gate
    # projection (one-hot @ (emb @ w_ih)) is ever needed.
    onehot0 = (lane == t0_ref[...]).astype(bf16)                 # (BP, VP)
    gx0 = jnp.dot(onehot0, tok_gates, preferred_element_type=f32)  # (BP, 4H)

    # outputs[0] stays zero (reference loop starts at i = 1); zero step 0 only.
    o_ref[pl.ds(0, 1), :, :] = jnp.zeros((1, BP, VP), f32)

    def step(i, carry):
        gx, h = carry                                            # (BP,4H), (BP,H)
        # GRU cell: x-side (precomputed table) + h-side dots, no lane concat.
        g = gx + jnp.dot(h.astype(bf16), w_gh,
                         preferred_element_type=f32) + b_gru     # (BP, 4H)
        r = jax.nn.sigmoid(g[:, 0:H])
        z = jax.nn.sigmoid(g[:, H:2 * H])
        n = jnp.tanh(g[:, 2 * H:3 * H] + r * g[:, 3 * H:4 * H])
        h_new = (1.0 - z) * n + z * h                            # (BP, H)

        # Vocab projection (lane-dense VP=128; padded lanes biased to -1e9).
        logits = jnp.dot(h_new.astype(bf16), w_out,
                         preferred_element_type=f32) + b_out     # (BP, VP)
        o_ref[pl.ds(i, 1), :, :] = logits[None]                  # write step i

        # Greedy argmax (first max lane) -> one-hot -> next-step gate proj.
        m = jnp.max(logits, axis=1, keepdims=True)               # (BP, 1)
        idx = jnp.min(jnp.where(logits == m, lane, VP),
                      axis=1, keepdims=True)                     # (BP, 1)
        onehot = (lane == idx).astype(bf16)                      # (BP, VP)
        gx_next = jnp.dot(onehot, tok_gates, preferred_element_type=f32)
        return (gx_next, h_new)

    lax.fori_loop(1, T, step, (gx0, h0), unroll=True)


# ---------------------------------------------------------------------------
# One-time weight preparation (hoisted out of the per-call path).
# ---------------------------------------------------------------------------
def prepare_params(params):
    f32, bf16 = jnp.float32, jnp.bfloat16
    emb_pad = jnp.zeros((VP, E), f32).at[:V, :].set(params["embedding"])

    # Encoder tables: mean-pool 1/L and the embedding matmul folded in.
    enc_q_tab = ((emb_pad @ params["w_enc_q"]) / LQ).astype(bf16)    # (VP, H)
    enc_a_tab = ((emb_pad @ params["w_enc_a"]) / LA).astype(bf16)    # (VP, H)
    b_enc = params["b_enc"].astype(f32)                              # (1, H)

    wih, whh = params["w_ih"], params["w_hh"]                        # (E,3H),(H,3H)
    bih, bhh = params["b_ih"], params["b_hh"]                        # (1,3H)

    # x-side GRU weight, columns [r | z | n_x | 0], pre-multiplied by emb:
    # per-step feedback becomes (one-hot) @ tok_gates on the MXU.
    w_gx = jnp.zeros((E, 4 * H), f32)
    w_gx = w_gx.at[:, 0:2 * H].set(wih[:, 0:2 * H])
    w_gx = w_gx.at[:, 2 * H:3 * H].set(wih[:, 2 * H:3 * H])
    tok_gates = (emb_pad @ w_gx).astype(bf16)                        # (VP, 4H)

    # h-side GRU weight, columns [r | z | 0 | n_h].
    w_gh = jnp.zeros((H, 4 * H), f32)
    w_gh = w_gh.at[:, 0:2 * H].set(whh[:, 0:2 * H])
    w_gh = w_gh.at[:, 3 * H:4 * H].set(whh[:, 2 * H:3 * H])
    w_gh = w_gh.astype(bf16)

    b_gru = jnp.concatenate(
        [bih[:, 0:2 * H] + bhh[:, 0:2 * H],
         bih[:, 2 * H:3 * H], bhh[:, 2 * H:3 * H]], axis=1).astype(f32)  # (1,4H)

    w_out = jnp.zeros((H, VP), f32).at[:, :V].set(params["w_out"]).astype(bf16)
    # Padded vocab lanes biased hugely negative so argmax never picks them.
    b_out = jnp.full((1, VP), -1e9, f32).at[:, :V].set(params["b_out"])
    return (enc_q_tab, enc_a_tab, b_enc, tok_gates, w_gh, b_gru, w_out, b_out)


# ---------------------------------------------------------------------------
# Net.forward equivalent.
# ---------------------------------------------------------------------------
@jax.jit
def net_forward(prepared, question, answer, target):
    nb = question.shape[0]
    padb = BP - nb
    q_ids = jnp.pad(question.astype(jnp.int32), ((0, padb), (0, 0)))   # (BP, LQ)
    a_ids = jnp.pad(answer.astype(jnp.int32), ((0, padb), (0, 0)))     # (BP, LA)
    t0 = jnp.pad(target[:, 0:1].astype(jnp.int32), ((0, padb), (0, 0)))  # (BP, 1)

    vmem = pl.BlockSpec(memory_space=pltpu.MemorySpace.VMEM)
    out = pl.pallas_call(
        _fused_kernel,
        out_shape=jax.ShapeDtypeStruct((T, BP, VP), jnp.float32),
        in_specs=[vmem] * 11,
        out_specs=vmem,
    )(q_ids, a_ids, t0, *prepared)

    # (T, BP, VP) -> (B, T, V): drop padding, permute like the PyTorch module.
    return jnp.transpose(out[:, :nb, :V], (1, 0, 2))


def init_params(key):
    ks = jax.random.split(key, 9)
    scale = 0.1
    return {
        "embedding": scale * jax.random.normal(ks[0], (V, E), jnp.float32),
        "w_enc_q":   scale * jax.random.normal(ks[1], (E, H), jnp.float32),
        "w_enc_a":   scale * jax.random.normal(ks[2], (E, H), jnp.float32),
        "b_enc":     jnp.zeros((1, H), jnp.float32),
        "w_ih":      scale * jax.random.normal(ks[3], (E, 3 * H), jnp.float32),
        "w_hh":      scale * jax.random.normal(ks[4], (H, 3 * H), jnp.float32),
        "b_ih":      jnp.zeros((1, 3 * H), jnp.float32),
        "b_hh":      jnp.zeros((1, 3 * H), jnp.float32),
        "w_out":     scale * jax.random.normal(ks[5], (H, V), jnp.float32),
        "b_out":     jnp.zeros((1, V), jnp.float32),
    }


if __name__ == "__main__":
    key = jax.random.PRNGKey(0)
    k_p, k_q, k_a, k_t = jax.random.split(key, 4)
    params = init_params(k_p)
    prepared = prepare_params(params)   # one-time: outside the per-call path

    question = jax.random.randint(k_q, (B, LQ), 0, V, dtype=jnp.int32)
    answer = jax.random.randint(k_a, (B, LA), 0, V, dtype=jnp.int32)
    target = jax.random.randint(k_t, (B, T), 0, V, dtype=jnp.int32)

    out = net_forward(prepared, question, answer, target)
    out = jax.block_until_ready(out)
    assert out.shape == (B, T, V), out.shape
    print("KERNEL_OK")
</pallas_src>

<mosaic_0001>
module attributes {stable_mosaic.version = 11 : i64} {
  func.func @_fused_kernel(%arg0: memref<8x8xi32, #tpu.memory_space<vmem>>, %arg1: memref<8x8xi32, #tpu.memory_space<vmem>>, %arg2: memref<8x1xi32, #tpu.memory_space<vmem>>, %arg3: memref<128x32xbf16, #tpu.memory_space<vmem>>, %arg4: memref<128x32xbf16, #tpu.memory_space<vmem>>, %arg5: memref<1x32xf32, #tpu.memory_space<vmem>>, %arg6: memref<128x128xbf16, #tpu.memory_space<vmem>>, %arg7: memref<32x128xbf16, #tpu.memory_space<vmem>>, %arg8: memref<1x128xf32, #tpu.memory_space<vmem>>, %arg9: memref<32x128xbf16, #tpu.memory_space<vmem>>, %arg10: memref<1x128xf32, #tpu.memory_space<vmem>>, %arg11: memref<8x8x128xf32, #tpu.memory_space<vmem>>) attributes {dimension_semantics = [], scalar_prefetch = 0 : i64, scratch_operands = 0 : i64, tpu.core_type = #tpu.core_type<tc>} {
    %0 = tpu.iota {dimensions = array<i32: 1>} : vector<8x128xi32>
    %c0 = arith.constant 0 : index
    %c0_0 = arith.constant 0 : index
    %1 = vector.load %arg0[%c0, %c0_0] : memref<8x8xi32, #tpu.memory_space<vmem>>, vector<8x8xi32>
    %cst = arith.constant 0.000000e+00 : f32
    %2 = vector.broadcast %cst : f32 to vector<8x128xf32>
    %3 = vector.extract_strided_slice %1 {offsets = [0, 0], sizes = [8, 1], strides = [1, 1]} : vector<8x8xi32> to vector<8x1xi32>
    %4 = vector.broadcast %3 : vector<8x1xi32> to vector<8x128xi32>
    %5 = arith.cmpi eq, %0, %4 : vector<8x128xi32>
    %6 = arith.extui %5 : vector<8x128xi1> to vector<8x128xi32>
    %7 = arith.sitofp %6 : vector<8x128xi32> to vector<8x128xf32>
    %8 = arith.addf %2, %7 : vector<8x128xf32>
    %9 = vector.extract_strided_slice %1 {offsets = [0, 1], sizes = [8, 1], strides = [1, 1]} : vector<8x8xi32> to vector<8x1xi32>
    %10 = vector.broadcast %9 : vector<8x1xi32> to vector<8x128xi32>
    %11 = arith.cmpi eq, %0, %10 : vector<8x128xi32>
    %12 = arith.extui %11 : vector<8x128xi1> to vector<8x128xi32>
    %13 = arith.sitofp %12 : vector<8x128xi32> to vector<8x128xf32>
    %14 = arith.addf %8, %13 : vector<8x128xf32>
    %15 = vector.extract_strided_slice %1 {offsets = [0, 2], sizes = [8, 1], strides = [1, 1]} : vector<8x8xi32> to vector<8x1xi32>
    %16 = vector.broadcast %15 : vector<8x1xi32> to vector<8x128xi32>
    %17 = arith.cmpi eq, %0, %16 : vector<8x128xi32>
    %18 = arith.extui %17 : vector<8x128xi1> to vector<8x128xi32>
    %19 = arith.sitofp %18 : vector<8x128xi32> to vector<8x128xf32>
    %20 = arith.addf %14, %19 : vector<8x128xf32>
    %21 = vector.extract_strided_slice %1 {offsets = [0, 3], sizes = [8, 1], strides = [1, 1]} : vector<8x8xi32> to vector<8x1xi32>
    %22 = vector.broadcast %21 : vector<8x1xi32> to vector<8x128xi32>
    %23 = arith.cmpi eq, %0, %22 : vector<8x128xi32>
    %24 = arith.extui %23 : vector<8x128xi1> to vector<8x128xi32>
    %25 = arith.sitofp %24 : vector<8x128xi32> to vector<8x128xf32>
    %26 = arith.addf %20, %25 : vector<8x128xf32>
    %27 = vector.extract_strided_slice %1 {offsets = [0, 4], sizes = [8, 1], strides = [1, 1]} : vector<8x8xi32> to vector<8x1xi32>
    %28 = vector.broadcast %27 : vector<8x1xi32> to vector<8x128xi32>
    %29 = arith.cmpi eq, %0, %28 : vector<8x128xi32>
    %30 = arith.extui %29 : vector<8x128xi1> to vector<8x128xi32>
    %31 = arith.sitofp %30 : vector<8x128xi32> to vector<8x128xf32>
    %32 = arith.addf %26, %31 : vector<8x128xf32>
    %33 = vector.extract_strided_slice %1 {offsets = [0, 5], sizes = [8, 1], strides = [1, 1]} : vector<8x8xi32> to vector<8x1xi32>
    %34 = vector.broadcast %33 : vector<8x1xi32> to vector<8x128xi32>
    %35 = arith.cmpi eq, %0, %34 : vector<8x128xi32>
    %36 = arith.extui %35 : vector<8x128xi1> to vector<8x128xi32>
    %37 = arith.sitofp %36 : vector<8x128xi32> to vector<8x128xf32>
    %38 = arith.addf %32, %37 : vector<8x128xf32>
    %39 = vector.extract_strided_slice %1 {offsets = [0, 6], sizes = [8, 1], strides = [1, 1]} : vector<8x8xi32> to vector<8x1xi32>
    %40 = vector.broadcast %39 : vector<8x1xi32> to vector<8x128xi32>
    %41 = arith.cmpi eq, %0, %40 : vector<8x128xi32>
    %42 = arith.extui %41 : vector<8x128xi1> to vector<8x128xi32>
    %43 = arith.sitofp %42 : vector<8x128xi32> to vector<8x128xf32>
    %44 = arith.addf %38, %43 : vector<8x128xf32>
    %45 = vector.extract_strided_slice %1 {offsets = [0, 7], sizes = [8, 1], strides = [1, 1]} : vector<8x8xi32> to vector<8x1xi32>
    %46 = vector.broadcast %45 : vector<8x1xi32> to vector<8x128xi32>
    %47 = arith.cmpi eq, %0, %46 : vector<8x128xi32>
    %48 = arith.extui %47 : vector<8x128xi1> to vector<8x128xi32>
    %49 = arith.sitofp %48 : vector<8x128xi32> to vector<8x128xf32>
    %50 = arith.addf %44, %49 : vector<8x128xf32>
    %51 = arith.truncf %50 : vector<8x128xf32> to vector<8x128xbf16>
    %c0_1 = arith.constant 0 : index
    %c0_2 = arith.constant 0 : index
    %52 = vector.load %arg1[%c0_1, %c0_2] : memref<8x8xi32, #tpu.memory_space<vmem>>, vector<8x8xi32>
    %cst_3 = arith.constant 0.000000e+00 : f32
    %53 = vector.broadcast %cst_3 : f32 to vector<8x128xf32>
    %54 = vector.extract_strided_slice %52 {offsets = [0, 0], sizes = [8, 1], strides = [1, 1]} : vector<8x8xi32> to vector<8x1xi32>
    %55 = vector.broadcast %54 : vector<8x1xi32> to vector<8x128xi32>
    %56 = arith.cmpi eq, %0, %55 : vector<8x128xi32>
    %57 = arith.extui %56 : vector<8x128xi1> to vector<8x128xi32>
    %58 = arith.sitofp %57 : vector<8x128xi32> to vector<8x128xf32>
    %59 = arith.addf %53, %58 : vector<8x128xf32>
    %60 = vector.extract_strided_slice %52 {offsets = [0, 1], sizes = [8, 1], strides = [1, 1]} : vector<8x8xi32> to vector<8x1xi32>
    %61 = vector.broadcast %60 : vector<8x1xi32> to vector<8x128xi32>
    %62 = arith.cmpi eq, %0, %61 : vector<8x128xi32>
    %63 = arith.extui %62 : vector<8x128xi1> to vector<8x128xi32>
    %64 = arith.sitofp %63 : vector<8x128xi32> to vector<8x128xf32>
    %65 = arith.addf %59, %64 : vector<8x128xf32>
    %66 = vector.extract_strided_slice %52 {offsets = [0, 2], sizes = [8, 1], strides = [1, 1]} : vector<8x8xi32> to vector<8x1xi32>
    %67 = vector.broadcast %66 : vector<8x1xi32> to vector<8x128xi32>
    %68 = arith.cmpi eq, %0, %67 : vector<8x128xi32>
    %69 = arith.extui %68 : vector<8x128xi1> to vector<8x128xi32>
    %70 = arith.sitofp %69 : vector<8x128xi32> to vector<8x128xf32>
    %71 = arith.addf %65, %70 : vector<8x128xf32>
    %72 = vector.extract_strided_slice %52 {offsets = [0, 3], sizes = [8, 1], strides = [1, 1]} : vector<8x8xi32> to vector<8x1xi32>
    %73 = vector.broadcast %72 : vector<8x1xi32> to vector<8x128xi32>
    %74 = arith.cmpi eq, %0, %73 : vector<8x128xi32>
    %75 = arith.extui %74 : vector<8x128xi1> to vector<8x128xi32>
    %76 = arith.sitofp %75 : vector<8x128xi32> to vector<8x128xf32>
    %77 = arith.addf %71, %76 : vector<8x128xf32>
    %78 = vector.extract_strided_slice %52 {offsets = [0, 4], sizes = [8, 1], strides = [1, 1]} : vector<8x8xi32> to vector<8x1xi32>
    %79 = vector.broadcast %78 : vector<8x1xi32> to vector<8x128xi32>
    %80 = arith.cmpi eq, %0, %79 : vector<8x128xi32>
    %81 = arith.extui %80 : vector<8x128xi1> to vector<8x128xi32>
    %82 = arith.sitofp %81 : vector<8x128xi32> to vector<8x128xf32>
    %83 = arith.addf %77, %82 : vector<8x128xf32>
    %84 = vector.extract_strided_slice %52 {offsets = [0, 5], sizes = [8, 1], strides = [1, 1]} : vector<8x8xi32> to vector<8x1xi32>
    %85 = vector.broadcast %84 : vector<8x1xi32> to vector<8x128xi32>
    %86 = arith.cmpi eq, %0, %85 : vector<8x128xi32>
    %87 = arith.extui %86 : vector<8x128xi1> to vector<8x128xi32>
    %88 = arith.sitofp %87 : vector<8x128xi32> to vector<8x128xf32>
    %89 = arith.addf %83, %88 : vector<8x128xf32>
    %90 = vector.extract_strided_slice %52 {offsets = [0, 6], sizes = [8, 1], strides = [1, 1]} : vector<8x8xi32> to vector<8x1xi32>
    %91 = vector.broadcast %90 : vector<8x1xi32> to vector<8x128xi32>
    %92 = arith.cmpi eq, %0, %91 : vector<8x128xi32>
    %93 = arith.extui %92 : vector<8x128xi1> to vector<8x128xi32>
    %94 = arith.sitofp %93 : vector<8x128xi32> to vector<8x128xf32>
    %95 = arith.addf %89, %94 : vector<8x128xf32>
    %96 = vector.extract_strided_slice %52 {offsets = [0, 7], sizes = [8, 1], strides = [1, 1]} : vector<8x8xi32> to vector<8x1xi32>
    %97 = vector.broadcast %96 : vector<8x1xi32> to vector<8x128xi32>
    %98 = arith.cmpi eq, %0, %97 : vector<8x128xi32>
    %99 = arith.extui %98 : vector<8x128xi1> to vector<8x128xi32>
    %100 = arith.sitofp %99 : vector<8x128xi32> to vector<8x128xf32>
    %101 = arith.addf %95, %100 : vector<8x128xf32>
    %102 = arith.truncf %101 : vector<8x128xf32> to vector<8x128xbf16>
    %c0_4 = arith.constant 0 : index
    %c0_5 = arith.constant 0 : index
    %103 = vector.load %arg3[%c0_4, %c0_5] : memref<128x32xbf16, #tpu.memory_space<vmem>>, vector<128x32xbf16>
    %cst_6 = arith.constant dense<0.000000e+00> : vector<8x32xf32>
    %104 = tpu.matmul %51, %103, %cst_6 {dimension_numbers = #tpu.dot_dimension_numbers<[1], [0], [0], [1], [0, 0, 1, 1], [], []>} : vector<8x128xbf16>, vector<128x32xbf16>, vector<8x32xf32> -> vector<8x32xf32>
    %c0_7 = arith.constant 0 : index
    %c0_8 = arith.constant 0 : index
    %105 = vector.load %arg4[%c0_7, %c0_8] : memref<128x32xbf16, #tpu.memory_space<vmem>>, vector<128x32xbf16>
    %cst_9 = arith.constant dense<0.000000e+00> : vector<8x32xf32>
    %106 = tpu.matmul %102, %105, %cst_9 {dimension_numbers = #tpu.dot_dimension_numbers<[1], [0], [0], [1], [0, 0, 1, 1], [], []>} : vector<8x128xbf16>, vector<128x32xbf16>, vector<8x32xf32> -> vector<8x32xf32>
    %107 = arith.addf %104, %106 : vector<8x32xf32>
    %c0_10 = arith.constant 0 : index
    %c0_11 = arith.constant 0 : index
    %108 = vector.load %arg5[%c0_10, %c0_11] : memref<1x32xf32, #tpu.memory_space<vmem>>, vector<1x32xf32>
    %109 = vector.broadcast %108 : vector<1x32xf32> to vector<8x32xf32>
    %110 = arith.addf %107, %109 : vector<8x32xf32>
    %111 = math.tanh %110 : vector<8x32xf32>
    %c0_12 = arith.constant 0 : index
    %c0_13 = arith.constant 0 : index
    %112 = vector.load %arg6[%c0_12, %c0_13] : memref<128x128xbf16, #tpu.memory_space<vmem>>, vector<128x128xbf16>
    %c0_14 = arith.constant 0 : index
    %c0_15 = arith.constant 0 : index
    %113 = vector.load %arg7[%c0_14, %c0_15] : memref<32x128xbf16, #tpu.memory_space<vmem>>, vector<32x128xbf16>
    %c0_16 = arith.constant 0 : index
    %c0_17 = arith.constant 0 : index
    %114 = vector.load %arg8[%c0_16, %c0_17] : memref<1x128xf32, #tpu.memory_space<vmem>>, vector<1x128xf32>
    %c0_18 = arith.constant 0 : index
    %c0_19 = arith.constant 0 : index
    %115 = vector.load %arg9[%c0_18, %c0_19] : memref<32x128xbf16, #tpu.memory_space<vmem>>, vector<32x128xbf16>
    %c0_20 = arith.constant 0 : index
    %c0_21 = arith.constant 0 : index
    %116 = vector.load %arg10[%c0_20, %c0_21] : memref<1x128xf32, #tpu.memory_space<vmem>>, vector<1x128xf32>
    %c0_22 = arith.constant 0 : index
    %c0_23 = arith.constant 0 : index
    %117 = vector.load %arg2[%c0_22, %c0_23] : memref<8x1xi32, #tpu.memory_space<vmem>>, vector<8x1xi32>
    %118 = vector.broadcast %117 : vector<8x1xi32> to vector<8x128xi32>
    %119 = arith.cmpi eq, %0, %118 : vector<8x128xi32>
    %120 = arith.extui %119 : vector<8x128xi1> to vector<8x128xi32>
    %121 = arith.sitofp %120 : vector<8x128xi32> to vector<8x128xf32>
    %122 = arith.truncf %121 : vector<8x128xf32> to vector<8x128xbf16>
    %cst_24 = arith.constant dense<0.000000e+00> : vector<8x128xf32>
    %123 = tpu.matmul %122, %112, %cst_24 {dimension_numbers = #tpu.dot_dimension_numbers<[1], [0], [0], [1], [0, 0, 1, 1], [], []>} : vector<8x128xbf16>, vector<128x128xbf16>, vector<8x128xf32> -> vector<8x128xf32>
    %cst_25 = arith.constant 0.000000e+00 : f32
    %124 = vector.broadcast %cst_25 : f32 to vector<1x8x128xf32>
    %c0_26 = arith.constant 0 : index
    %c0_27 = arith.constant 0 : index
    %c0_28 = arith.constant 0 : index
    %125 = vector.load %arg11[%c0_26, %c0_27, %c0_28] : memref<8x8x128xf32, #tpu.memory_space<vmem>>, vector<1x8x128xf32>
    tpu.vector_store %arg11[%c0_26, %c0_27, %c0_28], %124 {strides = array<i32>} : memref<8x8x128xf32, #tpu.memory_space<vmem>>, vector<1x8x128xf32>,
    %c1_i32 = arith.constant 1 : i32
    %126 = arith.truncf %111 : vector<8x32xf32> to vector<8x32xbf16>
    %cst_29 = arith.constant dense<0.000000e+00> : vector<8x128xf32>
    %127 = tpu.matmul %126, %113, %cst_29 {dimension_numbers = #tpu.dot_dimension_numbers<[1], [0], [0], [1], [0, 0, 1, 1], [], []>} : vector<8x32xbf16>, vector<32x128xbf16>, vector<8x128xf32> -> vector<8x128xf32>
    %128 = arith.addf %123, %127 : vector<8x128xf32>
    %129 = vector.broadcast %114 : vector<1x128xf32> to vector<8x128xf32>
    %130 = arith.addf %128, %129 : vector<8x128xf32>
    %131 = vector.extract_strided_slice %130 {offsets = [0, 0], sizes = [8, 32], strides = [1, 1]} : vector<8x128xf32> to vector<8x32xf32>
    %132 = arith.negf %131 : vector<8x32xf32>
    %133 = math.exp %132 : vector<8x32xf32>
    %cst_30 = arith.constant 1.000000e+00 : f32
    %134 = vector.broadcast %cst_30 : f32 to vector<8x32xf32>
    %135 = arith.addf %134, %133 : vector<8x32xf32>
    %136 = arith.divf %134, %135 : vector<8x32xf32>
    %137 = vector.extract_strided_slice %130 {offsets = [0, 32], sizes = [8, 32], strides = [1, 1]} : vector<8x128xf32> to vector<8x32xf32>
    %138 = arith.negf %137 : vector<8x32xf32>
    %139 = math.exp %138 : vector<8x32xf32>
    %cst_31 = arith.constant 1.000000e+00 : f32
    %140 = vector.broadcast %cst_31 : f32 to vector<8x32xf32>
    %141 = arith.addf %140, %139 : vector<8x32xf32>
    %142 = arith.divf %140, %141 : vector<8x32xf32>
    %143 = vector.extract_strided_slice %130 {offsets = [0, 64], sizes = [8, 32], strides = [1, 1]} : vector<8x128xf32> to vector<8x32xf32>
    %144 = vector.extract_strided_slice %130 {offsets = [0, 96], sizes = [8, 32], strides = [1, 1]} : vector<8x128xf32> to vector<8x32xf32>
    %145 = arith.mulf %136, %144 : vector<8x32xf32>
    %146 = arith.addf %143, %145 : vector<8x32xf32>
    %147 = math.tanh %146 : vector<8x32xf32>
    %cst_32 = arith.constant 1.000000e+00 : f32
    %148 = vector.broadcast %cst_32 : f32 to vector<8x32xf32>
    %149 = arith.subf %148, %142 : vector<8x32xf32>
    %150 = arith.mulf %149, %147 : vector<8x32xf32>
    %151 = arith.mulf %142, %111 : vector<8x32xf32>
    %152 = arith.addf %150, %151 : vector<8x32xf32>
    %153 = arith.truncf %152 : vector<8x32xf32> to vector<8x32xbf16>
    %cst_33 = arith.constant dense<0.000000e+00> : vector<8x128xf32>
    %154 = tpu.matmul %153, %115, %cst_33 {dimension_numbers = #tpu.dot_dimension_numbers<[1], [0], [0], [1], [0, 0, 1, 1], [], []>} : vector<8x32xbf16>, vector<32x128xbf16>, vector<8x128xf32> -> vector<8x128xf32>
    %155 = vector.broadcast %116 : vector<1x128xf32> to vector<8x128xf32>
    %156 = arith.addf %154, %155 : vector<8x128xf32>
    %157 = vector.shape_cast %156 : vector<8x128xf32> to vector<1x8x128xf32>
    %158 = arith.index_cast %c1_i32 : i32 to index
    %c0_34 = arith.constant 0 : index
    %c0_35 = arith.constant 0 : index
    %159 = vector.load %arg11[%158, %c0_34, %c0_35] : memref<8x8x128xf32, #tpu.memory_space<vmem>>, vector<1x8x128xf32>
    tpu.vector_store %arg11[%158, %c0_34, %c0_35], %157 {strides = array<i32>} : memref<8x8x128xf32, #tpu.memory_space<vmem>>, vector<1x8x128xf32>,
    %cst_36 = arith.constant dense<0xFF800000> : vector<8xf32>
    %160 = vector.multi_reduction <maximumf>, %156, %cst_36 [1] : vector<8x128xf32> to vector<8xf32>
    %161 = vector.shape_cast %160 : vector<8xf32> to vector<8x1xf32>
    %162 = vector.broadcast %161 : vector<8x1xf32> to vector<8x128xf32>
    %163 = arith.cmpf oeq, %156, %162 : vector<8x128xf32>
    %c128_i32 = arith.constant 128 : i32
    %164 = vector.broadcast %c128_i32 : i32 to vector<8x128xi32>
    %165 = arith.select %163, %0, %164 : vector<8x128xi1>, vector<8x128xi32>
    %cst_37 = arith.constant dense<2147483647> : vector<8xi32>
    %166 = vector.multi_reduction <minsi>, %165, %cst_37 [1] : vector<8x128xi32> to vector<8xi32>
    %167 = vector.shape_cast %166 : vector<8xi32> to vector<8x1xi32>
    %168 = vector.broadcast %167 : vector<8x1xi32> to vector<8x128xi32>
    %169 = arith.cmpi eq, %0, %168 : vector<8x128xi32>
    %170 = arith.extui %169 : vector<8x128xi1> to vector<8x128xi32>
    %171 = arith.sitofp %170 : vector<8x128xi32> to vector<8x128xf32>
    %172 = arith.truncf %171 : vector<8x128xf32> to vector<8x128xbf16>
    %cst_38 = arith.constant dense<0.000000e+00> : vector<8x128xf32>
    %173 = tpu.matmul %172, %112, %cst_38 {dimension_numbers = #tpu.dot_dimension_numbers<[1], [0], [0], [1], [0, 0, 1, 1], [], []>} : vector<8x128xbf16>, vector<128x128xbf16>, vector<8x128xf32> -> vector<8x128xf32>
    %c2_i32 = arith.constant 2 : i32
    %174 = arith.truncf %152 : vector<8x32xf32> to vector<8x32xbf16>
    %cst_39 = arith.constant dense<0.000000e+00> : vector<8x128xf32>
    %175 = tpu.matmul %174, %113, %cst_39 {dimension_numbers = #tpu.dot_dimension_numbers<[1], [0], [0], [1], [0, 0, 1, 1], [], []>} : vector<8x32xbf16>, vector<32x128xbf16>, vector<8x128xf32> -> vector<8x128xf32>
    %176 = arith.addf %173, %175 : vector<8x128xf32>
    %177 = vector.broadcast %114 : vector<1x128xf32> to vector<8x128xf32>
    %178 = arith.addf %176, %177 : vector<8x128xf32>
    %179 = vector.extract_strided_slice %178 {offsets = [0, 0], sizes = [8, 32], strides = [1, 1]} : vector<8x128xf32> to vector<8x32xf32>
    %180 = arith.negf %179 : vector<8x32xf32>
    %181 = math.exp %180 : vector<8x32xf32>
    %cst_40 = arith.constant 1.000000e+00 : f32
    %182 = vector.broadcast %cst_40 : f32 to vector<8x32xf32>
    %183 = arith.addf %182, %181 : vector<8x32xf32>
    %184 = arith.divf %182, %183 : vector<8x32xf32>
    %185 = vector.extract_strided_slice %178 {offsets = [0, 32], sizes = [8, 32], strides = [1, 1]} : vector<8x128xf32> to vector<8x32xf32>
    %186 = arith.negf %185 : vector<8x32xf32>
    %187 = math.exp %186 : vector<8x32xf32>
    %cst_41 = arith.constant 1.000000e+00 : f32
    %188 = vector.broadcast %cst_41 : f32 to vector<8x32xf32>
    %189 = arith.addf %188, %187 : vector<8x32xf32>
    %190 = arith.divf %188, %189 : vector<8x32xf32>
    %191 = vector.extract_strided_slice %178 {offsets = [0, 64], sizes = [8, 32], strides = [1, 1]} : vector<8x128xf32> to vector<8x32xf32>
    %192 = vector.extract_strided_slice %178 {offsets = [0, 96], sizes = [8, 32], strides = [1, 1]} : vector<8x128xf32> to vector<8x32xf32>
    %193 = arith.mulf %184, %192 : vector<8x32xf32>
    %194 = arith.addf %191, %193 : vector<8x32xf32>
    %195 = math.tanh %194 : vector<8x32xf32>
    %cst_42 = arith.constant 1.000000e+00 : f32
    %196 = vector.broadcast %cst_42 : f32 to vector<8x32xf32>
    %197 = arith.subf %196, %190 : vector<8x32xf32>
    %198 = arith.mulf %197, %195 : vector<8x32xf32>
    %199 = arith.mulf %190, %152 : vector<8x32xf32>
    %200 = arith.addf %198, %199 : vector<8x32xf32>
    %201 = arith.truncf %200 : vector<8x32xf32> to vector<8x32xbf16>
    %cst_43 = arith.constant dense<0.000000e+00> : vector<8x128xf32>
    %202 = tpu.matmul %201, %115, %cst_43 {dimension_numbers = #tpu.dot_dimension_numbers<[1], [0], [0], [1], [0, 0, 1, 1], [], []>} : vector<8x32xbf16>, vector<32x128xbf16>, vector<8x128xf32> -> vector<8x128xf32>
    %203 = vector.broadcast %116 : vector<1x128xf32> to vector<8x128xf32>
    %204 = arith.addf %202, %203 : vector<8x128xf32>
    %205 = vector.shape_cast %204 : vector<8x128xf32> to vector<1x8x128xf32>
    %206 = arith.index_cast %c2_i32 : i32 to index
    %c0_44 = arith.constant 0 : index
    %c0_45 = arith.constant 0 : index
    %207 = vector.load %arg11[%206, %c0_44, %c0_45] : memref<8x8x128xf32, #tpu.memory_space<vmem>>, vector<1x8x128xf32>
    tpu.vector_store %arg11[%206, %c0_44, %c0_45], %205 {strides = array<i32>} : memref<8x8x128xf32, #tpu.memory_space<vmem>>, vector<1x8x128xf32>,
    %cst_46 = arith.constant dense<0xFF800000> : vector<8xf32>
    %208 = vector.multi_reduction <maximumf>, %204, %cst_46 [1] : vector<8x128xf32> to vector<8xf32>
    %209 = vector.shape_cast %208 : vector<8xf32> to vector<8x1xf32>
    %210 = vector.broadcast %209 : vector<8x1xf32> to vector<8x128xf32>
    %211 = arith.cmpf oeq, %204, %210 : vector<8x128xf32>
    %c128_i32_47 = arith.constant 128 : i32
    %212 = vector.broadcast %c128_i32_47 : i32 to vector<8x128xi32>
    %213 = arith.select %211, %0, %212 : vector<8x128xi1>, vector<8x128xi32>
    %cst_48 = arith.constant dense<2147483647> : vector<8xi32>
    %214 = vector.multi_reduction <minsi>, %213, %cst_48 [1] : vector<8x128xi32> to vector<8xi32>
    %215 = vector.shape_cast %214 : vector<8xi32> to vector<8x1xi32>
    %216 = vector.broadcast %215 : vector<8x1xi32> to vector<8x128xi32>
    %217 = arith.cmpi eq, %0, %216 : vector<8x128xi32>
    %218 = arith.extui %217 : vector<8x128xi1> to vector<8x128xi32>
    %219 = arith.sitofp %218 : vector<8x128xi32> to vector<8x128xf32>
    %220 = arith.truncf %219 : vector<8x128xf32> to vector<8x128xbf16>
    %cst_49 = arith.constant dense<0.000000e+00> : vector<8x128xf32>
    %221 = tpu.matmul %220, %112, %cst_49 {dimension_numbers = #tpu.dot_dimension_numbers<[1], [0], [0], [1], [0, 0, 1, 1], [], []>} : vector<8x128xbf16>, vector<128x128xbf16>, vector<8x128xf32> -> vector<8x128xf32>
    %c3_i32 = arith.constant 3 : i32
    %222 = arith.truncf %200 : vector<8x32xf32> to vector<8x32xbf16>
    %cst_50 = arith.constant dense<0.000000e+00> : vector<8x128xf32>
    %223 = tpu.matmul %222, %113, %cst_50 {dimension_numbers = #tpu.dot_dimension_numbers<[1], [0], [0], [1], [0, 0, 1, 1], [], []>} : vector<8x32xbf16>, vector<32x128xbf16>, vector<8x128xf32> -> vector<8x128xf32>
    %224 = arith.addf %221, %223 : vector<8x128xf32>
    %225 = vector.broadcast %114 : vector<1x128xf32> to vector<8x128xf32>
    %226 = arith.addf %224, %225 : vector<8x128xf32>
    %227 = vector.extract_strided_slice %226 {offsets = [0, 0], sizes = [8, 32], strides = [1, 1]} : vector<8x128xf32> to vector<8x32xf32>
    %228 = arith.negf %227 : vector<8x32xf32>
    %229 = math.exp %228 : vector<8x32xf32>
    %cst_51 = arith.constant 1.000000e+00 : f32
    %230 = vector.broadcast %cst_51 : f32 to vector<8x32xf32>
    %231 = arith.addf %230, %229 : vector<8x32xf32>
    %232 = arith.divf %230, %231 : vector<8x32xf32>
    %233 = vector.extract_strided_slice %226 {offsets = [0, 32], sizes = [8, 32], strides = [1, 1]} : vector<8x128xf32> to vector<8x32xf32>
    %234 = arith.negf %233 : vector<8x32xf32>
    %235 = math.exp %234 : vector<8x32xf32>
    %cst_52 = arith.constant 1.000000e+00 : f32
    %236 = vector.broadcast %cst_52 : f32 to vector<8x32xf32>
    %237 = arith.addf %236, %235 : vector<8x32xf32>
    %238 = arith.divf %236, %237 : vector<8x32xf32>
    %239 = vector.extract_strided_slice %226 {offsets = [0, 64], sizes = [8, 32], strides = [1, 1]} : vector<8x128xf32> to vector<8x32xf32>
    %240 = vector.extract_strided_slice %226 {offsets = [0, 96], sizes = [8, 32], strides = [1, 1]} : vector<8x128xf32> to vector<8x32xf32>
    %241 = arith.mulf %232, %240 : vector<8x32xf32>
    %242 = arith.addf %239, %241 : vector<8x32xf32>
    %243 = math.tanh %242 : vector<8x32xf32>
    %cst_53 = arith.constant 1.000000e+00 : f32
    %244 = vector.broadcast %cst_53 : f32 to vector<8x32xf32>
    %245 = arith.subf %244, %238 : vector<8x32xf32>
    %246 = arith.mulf %245, %243 : vector<8x32xf32>
    %247 = arith.mulf %238, %200 : vector<8x32xf32>
    %248 = arith.addf %246, %247 : vector<8x32xf32>
    %249 = arith.truncf %248 : vector<8x32xf32> to vector<8x32xbf16>
    %cst_54 = arith.constant dense<0.000000e+00> : vector<8x128xf32>
    %250 = tpu.matmul %249, %115, %cst_54 {dimension_numbers = #tpu.dot_dimension_numbers<[1], [0], [0], [1], [0, 0, 1, 1], [], []>} : vector<8x32xbf16>, vector<32x128xbf16>, vector<8x128xf32> -> vector<8x128xf32>
    %251 = vector.broadcast %116 : vector<1x128xf32> to vector<8x128xf32>
    %252 = arith.addf %250, %251 : vector<8x128xf32>
    %253 = vector.shape_cast %252 : vector<8x128xf32> to vector<1x8x128xf32>
    %254 = arith.index_cast %c3_i32 : i32 to index
    %c0_55 = arith.constant 0 : index
    %c0_56 = arith.constant 0 : index
    %255 = vector.load %arg11[%254, %c0_55, %c0_56] : memref<8x8x128xf32, #tpu.memory_space<vmem>>, vector<1x8x128xf32>
    tpu.vector_store %arg11[%254, %c0_55, %c0_56], %253 {strides = array<i32>} : memref<8x8x128xf32, #tpu.memory_space<vmem>>, vector<1x8x128xf32>,
    %cst_57 = arith.constant dense<0xFF800000> : vector<8xf32>
    %256 = vector.multi_reduction <maximumf>, %252, %cst_57 [1] : vector<8x128xf32> to vector<8xf32>
    %257 = vector.shape_cast %256 : vector<8xf32> to vector<8x1xf32>
    %258 = vector.broadcast %257 : vector<8x1xf32> to vector<8x128xf32>
    %259 = arith.cmpf oeq, %252, %258 : vector<8x128xf32>
    %c128_i32_58 = arith.constant 128 : i32
    %260 = vector.broadcast %c128_i32_58 : i32 to vector<8x128xi32>
    %261 = arith.select %259, %0, %260 : vector<8x128xi1>, vector<8x128xi32>
    %cst_59 = arith.constant dense<2147483647> : vector<8xi32>
    %262 = vector.multi_reduction <minsi>, %261, %cst_59 [1] : vector<8x128xi32> to vector<8xi32>
    %263 = vector.shape_cast %262 : vector<8xi32> to vector<8x1xi32>
    %264 = vector.broadcast %263 : vector<8x1xi32> to vector<8x128xi32>
    %265 = arith.cmpi eq, %0, %264 : vector<8x128xi32>
    %266 = arith.extui %265 : vector<8x128xi1> to vector<8x128xi32>
    %267 = arith.sitofp %266 : vector<8x128xi32> to vector<8x128xf32>
    %268 = arith.truncf %267 : vector<8x128xf32> to vector<8x128xbf16>
    %cst_60 = arith.constant dense<0.000000e+00> : vector<8x128xf32>
    %269 = tpu.matmul %268, %112, %cst_60 {dimension_numbers = #tpu.dot_dimension_numbers<[1], [0], [0], [1], [0, 0, 1, 1], [], []>} : vector<8x128xbf16>, vector<128x128xbf16>, vector<8x128xf32> -> vector<8x128xf32>
    %c4_i32 = arith.constant 4 : i32
    %270 = arith.truncf %248 : vector<8x32xf32> to vector<8x32xbf16>
    %cst_61 = arith.constant dense<0.000000e+00> : vector<8x128xf32>
    %271 = tpu.matmul %270, %113, %cst_61 {dimension_numbers = #tpu.dot_dimension_numbers<[1], [0], [0], [1], [0, 0, 1, 1], [], []>} : vector<8x32xbf16>, vector<32x128xbf16>, vector<8x128xf32> -> vector<8x128xf32>
    %272 = arith.addf %269, %271 : vector<8x128xf32>
    %273 = vector.broadcast %114 : vector<1x128xf32> to vector<8x128xf32>
    %274 = arith.addf %272, %273 : vector<8x128xf32>
    %275 = vector.extract_strided_slice %274 {offsets = [0, 0], sizes = [8, 32], strides = [1, 1]} : vector<8x128xf32> to vector<8x32xf32>
    %276 = arith.negf %275 : vector<8x32xf32>
    %277 = math.exp %276 : vector<8x32xf32>
    %cst_62 = arith.constant 1.000000e+00 : f32
    %278 = vector.broadcast %cst_62 : f32 to vector<8x32xf32>
    %279 = arith.addf %278, %277 : vector<8x32xf32>
    %280 = arith.divf %278, %279 : vector<8x32xf32>
    %281 = vector.extract_strided_slice %274 {offsets = [0, 32], sizes = [8, 32], strides = [1, 1]} : vector<8x128xf32> to vector<8x32xf32>
    %282 = arith.negf %281 : vector<8x32xf32>
    %283 = math.exp %282 : vector<8x32xf32>
    %cst_63 = arith.constant 1.000000e+00 : f32
    %284 = vector.broadcast %cst_63 : f32 to vector<8x32xf32>
    %285 = arith.addf %284, %283 : vector<8x32xf32>
    %286 = arith.divf %284, %285 : vector<8x32xf32>
    %287 = vector.extract_strided_slice %274 {offsets = [0, 64], sizes = [8, 32], strides = [1, 1]} : vector<8x128xf32> to vector<8x32xf32>
    %288 = vector.extract_strided_slice %274 {offsets = [0, 96], sizes = [8, 32], strides = [1, 1]} : vector<8x128xf32> to vector<8x32xf32>
    %289 = arith.mulf %280, %288 : vector<8x32xf32>
    %290 = arith.addf %287, %289 : vector<8x32xf32>
    %291 = math.tanh %290 : vector<8x32xf32>
    %cst_64 = arith.constant 1.000000e+00 : f32
    %292 = vector.broadcast %cst_64 : f32 to vector<8x32xf32>
    %293 = arith.subf %292, %286 : vector<8x32xf32>
    %294 = arith.mulf %293, %291 : vector<8x32xf32>
    %295 = arith.mulf %286, %248 : vector<8x32xf32>
    %296 = arith.addf %294, %295 : vector<8x32xf32>
    %297 = arith.truncf %296 : vector<8x32xf32> to vector<8x32xbf16>
    %cst_65 = arith.constant dense<0.000000e+00> : vector<8x128xf32>
    %298 = tpu.matmul %297, %115, %cst_65 {dimension_numbers = #tpu.dot_dimension_numbers<[1], [0], [0], [1], [0, 0, 1, 1], [], []>} : vector<8x32xbf16>, vector<32x128xbf16>, vector<8x128xf32> -> vector<8x128xf32>
    %299 = vector.broadcast %116 : vector<1x128xf32> to vector<8x128xf32>
    %300 = arith.addf %298, %299 : vector<8x128xf32>
    %301 = vector.shape_cast %300 : vector<8x128xf32> to vector<1x8x128xf32>
    %302 = arith.index_cast %c4_i32 : i32 to index
    %c0_66 = arith.constant 0 : index
    %c0_67 = arith.constant 0 : index
    %303 = vector.load %arg11[%302, %c0_66, %c0_67] : memref<8x8x128xf32, #tpu.memory_space<vmem>>, vector<1x8x128xf32>
    tpu.vector_store %arg11[%302, %c0_66, %c0_67], %301 {strides = array<i32>} : memref<8x8x128xf32, #tpu.memory_space<vmem>>, vector<1x8x128xf32>,
    %cst_68 = arith.constant dense<0xFF800000> : vector<8xf32>
    %304 = vector.multi_reduction <maximumf>, %300, %cst_68 [1] : vector<8x128xf32> to vector<8xf32>
    %305 = vector.shape_cast %304 : vector<8xf32> to vector<8x1xf32>
    %306 = vector.broadcast %305 : vector<8x1xf32> to vector<8x128xf32>
    %307 = arith.cmpf oeq, %300, %306 : vector<8x128xf32>
    %c128_i32_69 = arith.constant 128 : i32
    %308 = vector.broadcast %c128_i32_69 : i32 to vector<8x128xi32>
    %309 = arith.select %307, %0, %308 : vector<8x128xi1>, vector<8x128xi32>
    %cst_70 = arith.constant dense<2147483647> : vector<8xi32>
    %310 = vector.multi_reduction <minsi>, %309, %cst_70 [1] : vector<8x128xi32> to vector<8xi32>
    %311 = vector.shape_cast %310 : vector<8xi32> to vector<8x1xi32>
    %312 = vector.broadcast %311 : vector<8x1xi32> to vector<8x128xi32>
    %313 = arith.cmpi eq, %0, %312 : vector<8x128xi32>
    %314 = arith.extui %313 : vector<8x128xi1> to vector<8x128xi32>
    %315 = arith.sitofp %314 : vector<8x128xi32> to vector<8x128xf32>
    %316 = arith.truncf %315 : vector<8x128xf32> to vector<8x128xbf16>
    %cst_71 = arith.constant dense<0.000000e+00> : vector<8x128xf32>
    %317 = tpu.matmul %316, %112, %cst_71 {dimension_numbers = #tpu.dot_dimension_numbers<[1], [0], [0], [1], [0, 0, 1, 1], [], []>} : vector<8x128xbf16>, vector<128x128xbf16>, vector<8x128xf32> -> vector<8x128xf32>
    %c5_i32 = arith.constant 5 : i32
    %318 = arith.truncf %296 : vector<8x32xf32> to vector<8x32xbf16>
    %cst_72 = arith.constant dense<0.000000e+00> : vector<8x128xf32>
    %319 = tpu.matmul %318, %113, %cst_72 {dimension_numbers = #tpu.dot_dimension_numbers<[1], [0], [0], [1], [0, 0, 1, 1], [], []>} : vector<8x32xbf16>, vector<32x128xbf16>, vector<8x128xf32> -> vector<8x128xf32>
    %320 = arith.addf %317, %319 : vector<8x128xf32>
    %321 = vector.broadcast %114 : vector<1x128xf32> to vector<8x128xf32>
    %322 = arith.addf %320, %321 : vector<8x128xf32>
    %323 = vector.extract_strided_slice %322 {offsets = [0, 0], sizes = [8, 32], strides = [1, 1]} : vector<8x128xf32> to vector<8x32xf32>
    %324 = arith.negf %323 : vector<8x32xf32>
    %325 = math.exp %324 : vector<8x32xf32>
    %cst_73 = arith.constant 1.000000e+00 : f32
    %326 = vector.broadcast %cst_73 : f32 to vector<8x32xf32>
    %327 = arith.addf %326, %325 : vector<8x32xf32>
    %328 = arith.divf %326, %327 : vector<8x32xf32>
    %329 = vector.extract_strided_slice %322 {offsets = [0, 32], sizes = [8, 32], strides = [1, 1]} : vector<8x128xf32> to vector<8x32xf32>
    %330 = arith.negf %329 : vector<8x32xf32>
    %331 = math.exp %330 : vector<8x32xf32>
    %cst_74 = arith.constant 1.000000e+00 : f32
    %332 = vector.broadcast %cst_74 : f32 to vector<8x32xf32>
    %333 = arith.addf %332, %331 : vector<8x32xf32>
    %334 = arith.divf %332, %333 : vector<8x32xf32>
    %335 = vector.extract_strided_slice %322 {offsets = [0, 64], sizes = [8, 32], strides = [1, 1]} : vector<8x128xf32> to vector<8x32xf32>
    %336 = vector.extract_strided_slice %322 {offsets = [0, 96], sizes = [8, 32], strides = [1, 1]} : vector<8x128xf32> to vector<8x32xf32>
    %337 = arith.mulf %328, %336 : vector<8x32xf32>
    %338 = arith.addf %335, %337 : vector<8x32xf32>
    %339 = math.tanh %338 : vector<8x32xf32>
    %cst_75 = arith.constant 1.000000e+00 : f32
    %340 = vector.broadcast %cst_75 : f32 to vector<8x32xf32>
    %341 = arith.subf %340, %334 : vector<8x32xf32>
    %342 = arith.mulf %341, %339 : vector<8x32xf32>
    %343 = arith.mulf %334, %296 : vector<8x32xf32>
    %344 = arith.addf %342, %343 : vector<8x32xf32>
    %345 = arith.truncf %344 : vector<8x32xf32> to vector<8x32xbf16>
    %cst_76 = arith.constant dense<0.000000e+00> : vector<8x128xf32>
    %346 = tpu.matmul %345, %115, %cst_76 {dimension_numbers = #tpu.dot_dimension_numbers<[1], [0], [0], [1], [0, 0, 1, 1], [], []>} : vector<8x32xbf16>, vector<32x128xbf16>, vector<8x128xf32> -> vector<8x128xf32>
    %347 = vector.broadcast %116 : vector<1x128xf32> to vector<8x128xf32>
    %348 = arith.addf %346, %347 : vector<8x128xf32>
    %349 = vector.shape_cast %348 : vector<8x128xf32> to vector<1x8x128xf32>
    %350 = arith.index_cast %c5_i32 : i32 to index
    %c0_77 = arith.constant 0 : index
    %c0_78 = arith.constant 0 : index
    %351 = vector.load %arg11[%350, %c0_77, %c0_78] : memref<8x8x128xf32, #tpu.memory_space<vmem>>, vector<1x8x128xf32>
    tpu.vector_store %arg11[%350, %c0_77, %c0_78], %349 {strides = array<i32>} : memref<8x8x128xf32, #tpu.memory_space<vmem>>, vector<1x8x128xf32>,
    %cst_79 = arith.constant dense<0xFF800000> : vector<8xf32>
    %352 = vector.multi_reduction <maximumf>, %348, %cst_79 [1] : vector<8x128xf32> to vector<8xf32>
    %353 = vector.shape_cast %352 : vector<8xf32> to vector<8x1xf32>
    %354 = vector.broadcast %353 : vector<8x1xf32> to vector<8x128xf32>
    %355 = arith.cmpf oeq, %348, %354 : vector<8x128xf32>
    %c128_i32_80 = arith.constant 128 : i32
    %356 = vector.broadcast %c128_i32_80 : i32 to vector<8x128xi32>
    %357 = arith.select %355, %0, %356 : vector<8x128xi1>, vector<8x128xi32>
    %cst_81 = arith.constant dense<2147483647> : vector<8xi32>
    %358 = vector.multi_reduction <minsi>, %357, %cst_81 [1] : vector<8x128xi32> to vector<8xi32>
    %359 = vector.shape_cast %358 : vector<8xi32> to vector<8x1xi32>
    %360 = vector.broadcast %359 : vector<8x1xi32> to vector<8x128xi32>
    %361 = arith.cmpi eq, %0, %360 : vector<8x128xi32>
    %362 = arith.extui %361 : vector<8x128xi1> to vector<8x128xi32>
    %363 = arith.sitofp %362 : vector<8x128xi32> to vector<8x128xf32>
    %364 = arith.truncf %363 : vector<8x128xf32> to vector<8x128xbf16>
    %cst_82 = arith.constant dense<0.000000e+00> : vector<8x128xf32>
    %365 = tpu.matmul %364, %112, %cst_82 {dimension_numbers = #tpu.dot_dimension_numbers<[1], [0], [0], [1], [0, 0, 1, 1], [], []>} : vector<8x128xbf16>, vector<128x128xbf16>, vector<8x128xf32> -> vector<8x128xf32>
    %c6_i32 = arith.constant 6 : i32
    %366 = arith.truncf %344 : vector<8x32xf32> to vector<8x32xbf16>
    %cst_83 = arith.constant dense<0.000000e+00> : vector<8x128xf32>
    %367 = tpu.matmul %366, %113, %cst_83 {dimension_numbers = #tpu.dot_dimension_numbers<[1], [0], [0], [1], [0, 0, 1, 1], [], []>} : vector<8x32xbf16>, vector<32x128xbf16>, vector<8x128xf32> -> vector<8x128xf32>
    %368 = arith.addf %365, %367 : vector<8x128xf32>
    %369 = vector.broadcast %114 : vector<1x128xf32> to vector<8x128xf32>
    %370 = arith.addf %368, %369 : vector<8x128xf32>
    %371 = vector.extract_strided_slice %370 {offsets = [0, 0], sizes = [8, 32], strides = [1, 1]} : vector<8x128xf32> to vector<8x32xf32>
    %372 = arith.negf %371 : vector<8x32xf32>
    %373 = math.exp %372 : vector<8x32xf32>
    %cst_84 = arith.constant 1.000000e+00 : f32
    %374 = vector.broadcast %cst_84 : f32 to vector<8x32xf32>
    %375 = arith.addf %374, %373 : vector<8x32xf32>
    %376 = arith.divf %374, %375 : vector<8x32xf32>
    %377 = vector.extract_strided_slice %370 {offsets = [0, 32], sizes = [8, 32], strides = [1, 1]} : vector<8x128xf32> to vector<8x32xf32>
    %378 = arith.negf %377 : vector<8x32xf32>
    %379 = math.exp %378 : vector<8x32xf32>
    %cst_85 = arith.constant 1.000000e+00 : f32
    %380 = vector.broadcast %cst_85 : f32 to vector<8x32xf32>
    %381 = arith.addf %380, %379 : vector<8x32xf32>
    %382 = arith.divf %380, %381 : vector<8x32xf32>
    %383 = vector.extract_strided_slice %370 {offsets = [0, 64], sizes = [8, 32], strides = [1, 1]} : vector<8x128xf32> to vector<8x32xf32>
    %384 = vector.extract_strided_slice %370 {offsets = [0, 96], sizes = [8, 32], strides = [1, 1]} : vector<8x128xf32> to vector<8x32xf32>
    %385 = arith.mulf %376, %384 : vector<8x32xf32>
    %386 = arith.addf %383, %385 : vector<8x32xf32>
    %387 = math.tanh %386 : vector<8x32xf32>
    %cst_86 = arith.constant 1.000000e+00 : f32
    %388 = vector.broadcast %cst_86 : f32 to vector<8x32xf32>
    %389 = arith.subf %388, %382 : vector<8x32xf32>
    %390 = arith.mulf %389, %387 : vector<8x32xf32>
    %391 = arith.mulf %382, %344 : vector<8x32xf32>
    %392 = arith.addf %390, %391 : vector<8x32xf32>
    %393 = arith.truncf %392 : vector<8x32xf32> to vector<8x32xbf16>
    %cst_87 = arith.constant dense<0.000000e+00> : vector<8x128xf32>
    %394 = tpu.matmul %393, %115, %cst_87 {dimension_numbers = #tpu.dot_dimension_numbers<[1], [0], [0], [1], [0, 0, 1, 1], [], []>} : vector<8x32xbf16>, vector<32x128xbf16>, vector<8x128xf32> -> vector<8x128xf32>
    %395 = vector.broadcast %116 : vector<1x128xf32> to vector<8x128xf32>
    %396 = arith.addf %394, %395 : vector<8x128xf32>
    %397 = vector.shape_cast %396 : vector<8x128xf32> to vector<1x8x128xf32>
    %398 = arith.index_cast %c6_i32 : i32 to index
    %c0_88 = arith.constant 0 : index
    %c0_89 = arith.constant 0 : index
    %399 = vector.load %arg11[%398, %c0_88, %c0_89] : memref<8x8x128xf32, #tpu.memory_space<vmem>>, vector<1x8x128xf32>
    tpu.vector_store %arg11[%398, %c0_88, %c0_89], %397 {strides = array<i32>} : memref<8x8x128xf32, #tpu.memory_space<vmem>>, vector<1x8x128xf32>,
    %cst_90 = arith.constant dense<0xFF800000> : vector<8xf32>
    %400 = vector.multi_reduction <maximumf>, %396, %cst_90 [1] : vector<8x128xf32> to vector<8xf32>
    %401 = vector.shape_cast %400 : vector<8xf32> to vector<8x1xf32>
    %402 = vector.broadcast %401 : vector<8x1xf32> to vector<8x128xf32>
    %403 = arith.cmpf oeq, %396, %402 : vector<8x128xf32>
    %c128_i32_91 = arith.constant 128 : i32
    %404 = vector.broadcast %c128_i32_91 : i32 to vector<8x128xi32>
    %405 = arith.select %403, %0, %404 : vector<8x128xi1>, vector<8x128xi32>
    %cst_92 = arith.constant dense<2147483647> : vector<8xi32>
    %406 = vector.multi_reduction <minsi>, %405, %cst_92 [1] : vector<8x128xi32> to vector<8xi32>
    %407 = vector.shape_cast %406 : vector<8xi32> to vector<8x1xi32>
    %408 = vector.broadcast %407 : vector<8x1xi32> to vector<8x128xi32>
    %409 = arith.cmpi eq, %0, %408 : vector<8x128xi32>
    %410 = arith.extui %409 : vector<8x128xi1> to vector<8x128xi32>
    %411 = arith.sitofp %410 : vector<8x128xi32> to vector<8x128xf32>
    %412 = arith.truncf %411 : vector<8x128xf32> to vector<8x128xbf16>
    %cst_93 = arith.constant dense<0.000000e+00> : vector<8x128xf32>
    %413 = tpu.matmul %412, %112, %cst_93 {dimension_numbers = #tpu.dot_dimension_numbers<[1], [0], [0], [1], [0, 0, 1, 1], [], []>} : vector<8x128xbf16>, vector<128x128xbf16>, vector<8x128xf32> -> vector<8x128xf32>
    %c7_i32 = arith.constant 7 : i32
    %414 = arith.truncf %392 : vector<8x32xf32> to vector<8x32xbf16>
    %cst_94 = arith.constant dense<0.000000e+00> : vector<8x128xf32>
    %415 = tpu.matmul %414, %113, %cst_94 {dimension_numbers = #tpu.dot_dimension_numbers<[1], [0], [0], [1], [0, 0, 1, 1], [], []>} : vector<8x32xbf16>, vector<32x128xbf16>, vector<8x128xf32> -> vector<8x128xf32>
    %416 = arith.addf %413, %415 : vector<8x128xf32>
    %417 = vector.broadcast %114 : vector<1x128xf32> to vector<8x128xf32>
    %418 = arith.addf %416, %417 : vector<8x128xf32>
    %419 = vector.extract_strided_slice %418 {offsets = [0, 0], sizes = [8, 32], strides = [1, 1]} : vector<8x128xf32> to vector<8x32xf32>
    %420 = arith.negf %419 : vector<8x32xf32>
    %421 = math.exp %420 : vector<8x32xf32>
    %cst_95 = arith.constant 1.000000e+00 : f32
    %422 = vector.broadcast %cst_95 : f32 to vector<8x32xf32>
    %423 = arith.addf %422, %421 : vector<8x32xf32>
    %424 = arith.divf %422, %423 : vector<8x32xf32>
    %425 = vector.extract_strided_slice %418 {offsets = [0, 32], sizes = [8, 32], strides = [1, 1]} : vector<8x128xf32> to vector<8x32xf32>
    %426 = arith.negf %425 : vector<8x32xf32>
    %427 = math.exp %426 : vector<8x32xf32>
    %cst_96 = arith.constant 1.000000e+00 : f32
    %428 = vector.broadcast %cst_96 : f32 to vector<8x32xf32>
    %429 = arith.addf %428, %427 : vector<8x32xf32>
    %430 = arith.divf %428, %429 : vector<8x32xf32>
    %431 = vector.extract_strided_slice %418 {offsets = [0, 64], sizes = [8, 32], strides = [1, 1]} : vector<8x128xf32> to vector<8x32xf32>
    %432 = vector.extract_strided_slice %418 {offsets = [0, 96], sizes = [8, 32], strides = [1, 1]} : vector<8x128xf32> to vector<8x32xf32>
    %433 = arith.mulf %424, %432 : vector<8x32xf32>
    %434 = arith.addf %431, %433 : vector<8x32xf32>
    %435 = math.tanh %434 : vector<8x32xf32>
    %cst_97 = arith.constant 1.000000e+00 : f32
    %436 = vector.broadcast %cst_97 : f32 to vector<8x32xf32>
    %437 = arith.subf %436, %430 : vector<8x32xf32>
    %438 = arith.mulf %437, %435 : vector<8x32xf32>
    %439 = arith.mulf %430, %392 : vector<8x32xf32>
    %440 = arith.addf %438, %439 : vector<8x32xf32>
    %441 = arith.truncf %440 : vector<8x32xf32> to vector<8x32xbf16>
    %cst_98 = arith.constant dense<0.000000e+00> : vector<8x128xf32>
    %442 = tpu.matmul %441, %115, %cst_98 {dimension_numbers = #tpu.dot_dimension_numbers<[1], [0], [0], [1], [0, 0, 1, 1], [], []>} : vector<8x32xbf16>, vector<32x128xbf16>, vector<8x128xf32> -> vector<8x128xf32>
    %443 = vector.broadcast %116 : vector<1x128xf32> to vector<8x128xf32>
    %444 = arith.addf %442, %443 : vector<8x128xf32>
    %445 = vector.shape_cast %444 : vector<8x128xf32> to vector<1x8x128xf32>
    %446 = arith.index_cast %c7_i32 : i32 to index
    %c0_99 = arith.constant 0 : index
    %c0_100 = arith.constant 0 : index
    %447 = vector.load %arg11[%446, %c0_99, %c0_100] : memref<8x8x128xf32, #tpu.memory_space<vmem>>, vector<1x8x128xf32>
    tpu.vector_store %arg11[%446, %c0_99, %c0_100], %445 {strides = array<i32>} : memref<8x8x128xf32, #tpu.memory_space<vmem>>, vector<1x8x128xf32>,
    %cst_101 = arith.constant dense<0xFF800000> : vector<8xf32>
    %448 = vector.multi_reduction <maximumf>, %444, %cst_101 [1] : vector<8x128xf32> to vector<8xf32>
    %449 = vector.shape_cast %448 : vector<8xf32> to vector<8x1xf32>
    %450 = vector.broadcast %449 : vector<8x1xf32> to vector<8x128xf32>
    %451 = arith.cmpf oeq, %444, %450 : vector<8x128xf32>
    %c128_i32_102 = arith.constant 128 : i32
    %452 = vector.broadcast %c128_i32_102 : i32 to vector<8x128xi32>
    %453 = arith.select %451, %0, %452 : vector<8x128xi1>, vector<8x128xi32>
    %cst_103 = arith.constant dense<2147483647> : vector<8xi32>
    %454 = vector.multi_reduction <minsi>, %453, %cst_103 [1] : vector<8x128xi32> to vector<8xi32>
    %455 = vector.shape_cast %454 : vector<8xi32> to vector<8x1xi32>
    %456 = vector.broadcast %455 : vector<8x1xi32> to vector<8x128xi32>
    %457 = arith.cmpi eq, %0, %456 : vector<8x128xi32>
    %458 = arith.extui %457 : vector<8x128xi1> to vector<8x128xi32>
    %459 = arith.sitofp %458 : vector<8x128xi32> to vector<8x128xf32>
    %460 = arith.truncf %459 : vector<8x128xf32> to vector<8x128xbf16>
    %cst_104 = arith.constant dense<0.000000e+00> : vector<8x128xf32>
    %461 = tpu.matmul %460, %112, %cst_104 {dimension_numbers = #tpu.dot_dimension_numbers<[1], [0], [0], [1], [0, 0, 1, 1], [], []>} : vector<8x128xbf16>, vector<128x128xbf16>, vector<8x128xf32> -> vector<8x128xf32>
    %c7_i32_105 = arith.constant 7 : i32
    return
  }
}

</mosaic_0001>

<bundles_post_ra>
// kernel: net_forward.1
= control target key start
LH: loop header
LB: loop body
LE: loop exit
PB: predicated region body
PF: predicated region fallthrough
CT: control target
= control target key end

     0   :  { %v1466_v0 = vmov 0   ;;  %v1467_v3 = vmov 2   ;;  %v1468_v4 = vmov 1   ;;  %v1469_v5 = vmov 3   ;;  %s1476_s29 = smov 32   ;;  %s1478_s30 = smov 96   ;;  %s1922_s1 = inlined_call_operand.vmem [shape: s32[8,8], index: 1, kind: input, shape index: {}]   ;;  %s1923_s0 = inlined_call_operand.vmem [shape: s32[8,8], index: 0, kind: input, shape index: {}]   ;;  %s1924_s4 = inlined_call_operand.vmem [shape: bf16[128,32], index: 4, kind: input, shape index: {}]   ;;  %s1925_s3 = inlined_call_operand.vmem [shape: bf16[128,32], index: 3, kind: input, shape index: {}]   ;;  %s1926_s2 = inlined_call_operand.vmem [shape: s32[8,1], index: 2, kind: input, shape index: {}]   ;;  %s1927_s7 = inlined_call_operand.vmem [shape: bf16[32,128], index: 7, kind: input, shape index: {}]   ;;  %s1928_s5 = inlined_call_operand.vmem [shape: f32[1,32], index: 5, kind: input, shape index: {}]   ;;  %s1929_s6 = inlined_call_operand.vmem [shape: bf16[128,128], index: 6, kind: input, shape index: {}]   ;;  %s1930_s8 = inlined_call_operand.vmem [shape: f32[1,128], index: 8, kind: input, shape index: {}]   ;;  %s1931_s9 = inlined_call_operand.vmem [shape: bf16[32,128], index: 9, kind: input, shape index: {}]   ;;  %s1932_s10 = inlined_call_operand.vmem [shape: f32[1,128], index: 10, kind: input, shape index: {}]   ;;  %s1933_s11 = inlined_call_operand.vmem [shape: f32[8,8,128], index: 11, kind: output, shape index: {}]  }
   0x1   :  { %1404 = vset.pattern.permute.xlu1 %v1466_v0  ;;  %1402 = vset.pattern.permute.xlu0 %v1466_v0  ;;  %v99_v1 = vld [vmem:[%s1922_s1] sm:$0xff]  ;;  %v1470_v6 = vmov 4   ;;  %v1471_v7 = vmov 6   ;;  %v1472_v8 = vmov 5   ;;  %v1473_v9 = vmov 7   ;;  %v1376_v10 = vld [vmem:[%s1924_s4 + $0x38] sm:$0xff] }
   0x2   :  { %v41_v2 = vld [vmem:[%s1923_s0] sm:$0xff]  ;;  %101 = vperm.xlu1 %1404, %v99_v1   ;;  %1406 = vset.pattern.permute.xlu2 %v1467_v3  ;;  %v1375_v12 = vld [vmem:[%s1924_s4 + $0x30] sm:$0xff]  ;;  %v1368_v13 = vld [vmem:[%s1925_s3 + $0x38] sm:$0xff]  ;;  %v39_v31 = vlaneseq  ;;  %v1474_v39 = vmov 0.0  }
   0x3   :  { %43 = vperm.xlu0 %1402, %v41_v2   ;;  %57 = vperm.xlu2 %1406, %v41_v2   ;;  %v1374_v14 = vld [vmem:[%s1924_s4 + $0x28] sm:$0xff]  ;;  %v1367_v15 = vld [vmem:[%s1925_s3 + $0x30] sm:$0xff]  ;;  %v1373_v16 = vld [vmem:[%s1924_s4 + $0x20] sm:$0xff]  ;;  %351 = vst [vmem:[%s1933_s11] sm:$0xff] %v1474_v39 }
   0x4   :  { %237 = vmatpush.bf16.msra.mxu0 %v1376_v10  ;;  %298 = vmatpush.bf16.msra.mxu1 %v1368_v13  ;;  %v1366_v17 = vld [vmem:[%s1925_s3 + $0x28] sm:$0xff]  ;;  %v1372_v19 = vld [vmem:[%s1924_s4 + $0x18] sm:$0xff]  ;;  %v1365_v20 = vld [vmem:[%s1925_s3 + $0x20] sm:$0xff]  ;;  %v1595_v36 = vand.u32 127, %v39_v31 }
   0x5   :  { %v1371_v22 = vld [vmem:[%s1924_s4 + $0x10] sm:$0xff]  ;;  %v1364_v23 = vld [vmem:[%s1925_s3 + $0x18] sm:$0xff]  ;;  %v1370_v26 = vld [vmem:[%s1924_s4 + $0x8] sm:$0xff] }
   0x6   :  { %v1363_v27 = vld [vmem:[%s1925_s3 + $0x10] sm:$0xff]  ;;  %v1369_v29 = vld [vmem:[%s1924_s4] sm:$0xff]  ;;  %v1362_v30 = vld [vmem:[%s1925_s3 + $0x8] sm:$0xff] }
   0x7   :  { %v1361_v32 = vld [vmem:[%s1925_s3] sm:$0xff]  ;;  %v1603_v38 = vld [vmem:[%s1927_s7 + $0x8] sm:$0xff] }
   0x8   :  { %238 = vmatpush.bf16.msra.mxu0 %v1375_v12  ;;  %299 = vmatpush.bf16.msra.mxu1 %v1367_v15  ;;  %v343_v37 = vld [vmem:[%s1926_s2] sm:$0xff] }
   0x9   :  { %375 = vmatpush.bf16.msra.mxu3 %v1603_v38  ;;  %v1642_v15 = vld [vmem:[%s1927_s7] sm:$0xff] }
   0xa   :  { %1405 = vset.pattern.permute.xlu1 %v1468_v4 }
   0xb   :  { %1403 = vset.pattern.permute.xlu0 %v1468_v4  ;;  %108 = vperm.xlu1 %1405, %v99_v1  }
   0xc   :  { %50 = vperm.xlu0 %1403, %v41_v2   ;;  %115 = vperm.xlu2 %1406, %v99_v1  }
   0xd   :  { %239 = vmatpush.bf16.msra.mxu0 %v1374_v14  ;;  %300 = vmatpush.bf16.msra.mxu1 %v1366_v17  ;;  %v1655_v17 = vld [vmem:[%s1929_s6 + $0x30] sm:$0xff] }
   0xe   :  { %376 = vmatpush.bf16.msra.mxu3 %v1642_v15 }
  0x11   :  { %240 = vmatpush.bf16.msra.mxu0 %v1373_v16  ;;  %301 = vmatpush.bf16.msra.mxu1 %v1365_v20  ;;  %v1647_v16 = vld [vmem:[%s1929_s6 + $0x38] sm:$0xff] }
  0x12   :  { %430 = vmatpush.bf16.msrb.mxu3 %v1647_v16  ;;  %v1676_v20 = vld [vmem:[%s1929_s6 + $0x18] sm:$0xff] }
  0x13   :  { %1407 = vset.pattern.permute.xlu1 %v1469_v5 }
  0x14   :  { %1409 = vset.pattern.permute.xlu0 %v1470_v6  ;;  %64 = vperm.xlu1 %1407, %v41_v2  }
  0x15   :  { %71 = vperm.xlu0 %1409, %v41_v2   ;;  %1408 = vset.pattern.permute.xlu2 %v1469_v5 }
  0x16   :  { %122 = vperm.xlu2 %1408, %v99_v1   ;;  %241 = vmatpush.bf16.msra.mxu0 %v1372_v19  ;;  %v1669_v19 = vld [vmem:[%s1929_s6 + $0x20] sm:$0xff] }
  0x17   :  { %302 = vmatpush.bf16.msra.mxu1 %v1364_v23  ;;  %431 = vmatpush.bf16.msrb.mxu3 %v1655_v17  ;;  %v1696_v23 = vld [vmem:[%s1929_s6] sm:$0xff] }
  0x1a   :  { %242 = vmatpush.bf16.msra.mxu0 %v1371_v22  ;;  %v1689_v22 = vld [vmem:[%s1929_s6 + $0x8] sm:$0xff] }
  0x1b   :  { %303 = vmatpush.bf16.msra.mxu1 %v1363_v27 }
  0x1c   :  { %1410 = vset.pattern.permute.xlu1 %v1470_v6 }
  0x1d   :  { %1414 = vset.pattern.permute.xlu0 %v1471_v7  ;;  %129 = vperm.xlu1 %1410, %v99_v1  }
  0x1e   :  { %143 = vperm.xlu0 %1414, %v99_v1   ;;  %1411 = vset.pattern.permute.xlu2 %v1472_v8 }
  0x1f   :  { %78 = vperm.xlu2 %1411, %v41_v2   ;;  %243 = vmatpush.bf16.msra.mxu0 %v1370_v26 }
  0x20   :  { %304 = vmatpush.bf16.msra.mxu1 %v1362_v30 }
  0x23   :  { %244 = vmatpush.bf16.msra.mxu0 %v1369_v29 }
  0x24   :  { %305 = vmatpush.bf16.msra.mxu1 %v1361_v32 }
  0x25   :  { %1412 = vset.pattern.permute.xlu1 %v1472_v8 }
  0x26   :  { %1418 = vset.pattern.permute.xlu0 %v1466_v0  ;;  %136 = vperm.xlu1 %1412, %v99_v1  }
  0x27   :  { %1413 = vset.pattern.permute.xlu2 %v1471_v7  ;;  %561 = vmatpush.bf16.msrb.mxu0 %v1647_v16 }
  0x28   :  { %85 = vperm.xlu2 %1413, %v41_v2  }
  0x2b   :  { %562 = vmatpush.bf16.msrb.mxu0 %v1655_v17 }
  0x2e   :  { %1415 = vset.pattern.permute.xlu1 %v1473_v9 }
  0x2f   :  { %92 = vperm.xlu1 %1415, %v41_v2  }
  0x30   :  { %1416 = vset.pattern.permute.xlu2 %v1473_v9 }
  0x31   :  { %150 = vperm.xlu2 %1416, %v99_v1  }
  0x37   :  { %1417 = vset.pattern.permute.xlu1 %v1466_v0 }
  0x38   :  { %345 = vperm.xlu1 %1417, %v343_v37  }
  0x5d   :  { %v1548_v11 = vpop.permute.xlu2 %57 }
  0x5e   :  { %vm59_vm5 = vcmp.eq.s32.totalorder %v1595_v36, %v1548_v11 }
  0x5f   :  { %v1186_v50 = vsel %vm59_vm5, 1.0, %v1474_v39 }
  0x66   :  { %v116_v18 = vpop.permute.xlu2 %115 }
  0x67   :  { %vm117_vm4 = vcmp.eq.s32.totalorder %v1595_v36, %v116_v18  ;;  %v1662_v18 = vld [vmem:[%s1929_s6 + $0x28] sm:$0xff] }
  0x68   :  { %v1194_v49 = vsel %vm117_vm4, 1.0, %v1474_v39  ;;  %432 = vmatpush.bf16.msrb.mxu3 %v1662_v18  ;;  %563 = vmatpush.bf16.msrb.mxu0 %v1662_v18 }
  0x6c   :  { %433 = vmatpush.bf16.msrb.mxu3 %v1669_v19  ;;  %564 = vmatpush.bf16.msrb.mxu0 %v1669_v19 }
  0x70   :  { %v123_v25 = vpop.permute.xlu2 %122  ;;  %434 = vmatpush.bf16.msrb.mxu3 %v1676_v20  ;;  %565 = vmatpush.bf16.msrb.mxu0 %v1676_v20 }
  0x71   :  { %vm124_vm7 = vcmp.eq.s32.totalorder %v1595_v36, %v123_v25  ;;  %v1419_v25 = vld [vmem:[%s1928_s5] ss:$0 sm:$0xff] }
  0x72   :  { %v1195_v53 = vsel %vm124_vm7, 1.0, %v1474_v39 }
  0x74   :  { %v102_v21 = vpop.permute.xlu1 %101 }
  0x75   :  { %v44_v24 = vpop.permute.xlu0 %43  ;;  %vm103_vm3 = vcmp.eq.s32.totalorder %v1595_v36, %v102_v21  ;;  %v1682_v21 = vld [vmem:[%s1929_s6 + $0x10] sm:$0xff] }
  0x76   :  { %vm45_vm1 = vcmp.eq.s32.totalorder %v1595_v36, %v44_v24  ;;  %v1192_v44 = vsel %vm103_vm3, 1.0, %v1474_v39  ;;  %435 = vmatpush.bf16.msrb.mxu3 %v1682_v21  ;;  %566 = vmatpush.bf16.msrb.mxu0 %v1682_v21 }
  0x77   :  { %v1184_v42 = vsel %vm45_vm1, 1.0, %v1474_v39 }
  0x79   :  { %v79_v34 = vpop.permute.xlu2 %78 }
  0x7a   :  { %vm80_vm11 = vcmp.eq.s32.totalorder %v1595_v36, %v79_v34  ;;  %436 = vmatpush.bf16.msrb.mxu3 %v1689_v22  ;;  %567 = vmatpush.bf16.msrb.mxu0 %v1689_v22  ;;  %v1475_v34 = vmov 1.0|1.0  }
  0x7b   :  { %v1189_v2 = vsel %vm80_vm11, 1.0, %v1474_v39 }
  0x7d   :  { %v109_v28 = vpop.permute.xlu1 %108 }
  0x7e   :  { %v51_v33 = vpop.permute.xlu0 %50  ;;  %vm110_vm0 = vcmp.eq.s32.totalorder %v1595_v36, %v109_v28  ;;  %437 = vmatpush.bf16.msrb.mxu3 %v1696_v23  ;;  %568 = vmatpush.bf16.msrb.mxu0 %v1696_v23 }
  0x7f   :  { %vm52_vm2 = vcmp.eq.s32.totalorder %v1595_v36, %v51_v33  ;;  %v1193_v40 = vsel %vm110_vm0, 1.0, %v1474_v39  ;;  %vm365_vm0 = vcmask 261120  }
  0x80   :  { %v1185_v43 = vsel %vm52_vm2, 1.0, %v1474_v39  ;;  %v113_v46 = vadd.f32 %v1193_v40, %v1192_v44  ;;  %v1722_v40 = vld [vmem:[%s1930_s8] ss:$0 sm:$0xff]  ;;  %s1477_s8 = smov 64  }
  0x81   :  { %v55_v48 = vadd.f32 %v1185_v43, %v1184_v42 }
  0x82   :  { %v86_v45 = vpop.permute.xlu2 %85  ;;  %v120_v51 = vadd.f32 %v1194_v49, %v113_v46 }
  0x83   :  { %v62_v54 = vadd.f32 %v1186_v50, %v55_v48  ;;  %vm87_vm14 = vcmp.eq.s32.totalorder %v1595_v36, %v86_v45 }
  0x84   :  { %v127_v60 = vadd.f32 %v1195_v53, %v120_v51  ;;  %v1190_v7 = vsel %vm87_vm14, 1.0, %v1474_v39 }
  0x86   :  { %v65_v35 = vpop.permute.xlu1 %64 }
  0x87   :  { %v72_v41 = vpop.permute.xlu0 %71  ;;  %vm66_vm6 = vcmp.eq.s32.totalorder %v1595_v36, %v65_v35 }
  0x88   :  { %v1187_v52 = vsel %vm66_vm6, 1.0, %v1474_v39  ;;  %vm73_vm9 = vcmp.eq.s32.totalorder %v1595_v36, %v72_v41 }
  0x89   :  { %v69_v56 = vadd.f32 %v1187_v52, %v62_v54  ;;  %v1188_v59 = vsel %vm73_vm9, 1.0, %v1474_v39 }
  0x8b   :  { %v151_v58 = vpop.permute.xlu2 %150  ;;  %v76_v63 = vadd.f32 %v1188_v59, %v69_v56 }
  0x8c   :  { %vm152_vm13 = vcmp.eq.s32.totalorder %v1595_v36, %v151_v58 }
  0x8d   :  { %v1199_v4 = vsel %vm152_vm13, 1.0, %v1474_v39  ;;  %v83_v6 = vadd.f32 %v1189_v2, %v76_v63  ;;  %v1732_v63 = vld [vmem:[%s1931_s9 + $0x8] sm:$0xff] }
  0x8e   :  { %517 = vmatpush.bf16.msra.mxu2 %v1732_v63  ;;  %626 = vmatpush.bf16.msrb.mxu1 %v1732_v63 }
  0x8f   :  { %v130_v47 = vpop.permute.xlu1 %129  ;;  %v90_v11 = vadd.f32 %v1190_v7, %v83_v6 }
  0x90   :  { %vm131_vm8 = vcmp.eq.s32.totalorder %v1595_v36, %v130_v47  ;;  %v144_v55 = vpop.permute.xlu0 %143 }
  0x91   :  { %v1196_v57 = vsel %vm131_vm8, 1.0, %v1474_v39  ;;  %vm145_vm10 = vcmp.eq.s32.totalorder %v1595_v36, %v144_v55 }
  0x92   :  { %v134_v62 = vadd.f32 %v1196_v57, %v127_v60  ;;  %v1198_v1 = vsel %vm145_vm10, 1.0, %v1474_v39 }
  0x98   :  { %v137_v61 = vpop.permute.xlu1 %136 }
  0x99   :  { %vm138_vm12 = vcmp.eq.s32.totalorder %v1595_v36, %v137_v61 }
  0x9a   :  { %v1197_v0 = vsel %vm138_vm12, 1.0, %v1474_v39 }
  0x9b   :  { %v141_v3 = vadd.f32 %v1197_v0, %v134_v62  ;;  %v1738_v0 = vld [vmem:[%s1931_s9] sm:$0xff] }
  0x9c   :  { %518 = vmatpush.bf16.msra.mxu2 %v1738_v0  ;;  %627 = vmatpush.bf16.msrb.mxu1 %v1738_v0 }
  0x9d   :  { %v148_v5 = vadd.f32 %v1198_v1, %v141_v3 }
  0x9f   :  { %v155_v8 = vadd.f32 %v1199_v4, %v148_v5 }
  0xa0   :  { %554 = vmatpush.bf16.msrb.mxu2 %v1603_v38 }
  0xa1   :  { %v93_v9 = vpop.permute.xlu1 %92  ;;  %v156_v10 = vpack.c.bf16 %v155_v8, %v155_v8 }
  0xa2   :  { %vm94_vm15 = vcmp.eq.s32.totalorder %v1595_v36, %v93_v9 }
  0xa3   :  { %v1191_v12 = vsel %vm94_vm15, 1.0, %v1474_v39  ;;  %245 = vmatmul.bf16.vlgmr.msra.gmra.mxu0 %v156_v10  ;;  %v1777_v39 = vld [vmem:[%s1932_s10] ss:$0 sm:$0xff] }
  0xa4   :  { %v97_v13 = vadd.f32 %v1191_v12, %v90_v11  ;;  %779 = vmatpush.bf16.msra.mxu0 %v1647_v16  ;;  %555 = vmatpush.bf16.msrb.mxu2 %v1642_v15 }
  0xa6   :  { %v98_v14 = vpack.c.bf16 %v97_v13, %v97_v13 }
  0xa8   :  { %306 = vmatmul.bf16.vlgmr.msra.gmra.mxu1 %v98_v14  ;;  %780 = vmatpush.bf16.msra.mxu0 %v1655_v17 }
  0xa9   :  { %735 = vmatpush.bf16.msra.mxu1 %v1732_v63 }
  0xaa   :  { %v346_v33 = vpop.permute.xlu1 %345 }
  0xab   :  { %vm347_vm1 = vcmp.eq.s32.totalorder %v1595_v36, %v346_v33 }
  0xac   :  { %781 = vmatpush.bf16.msra.mxu0 %v1662_v18  ;;  %vm1306_vm2 = vmpackc.low %vm347_vm1, %vm347_vm1 }
  0xad   :  { %736 = vmatpush.bf16.msra.mxu1 %v1738_v0 }
  0xb0   :  { %782 = vmatpush.bf16.msra.mxu0 %v1669_v19 }
  0xb4   :  { %783 = vmatpush.bf16.msra.mxu0 %v1676_v20 }
  0xb8   :  { %784 = vmatpush.bf16.msra.mxu0 %v1682_v21 }
  0xbc   :  { %785 = vmatpush.bf16.msra.mxu0 %v1689_v22 }
  0xc0   :  { %786 = vmatpush.bf16.msra.mxu0 %v1696_v23 }
 0x120   :  { %v246_v24 = vpop.f32.mrf.mxu0 }
 0x125   :  { %v307_v26 = vpop.f32.mrf.mxu1 }
 0x126   :  { %v308_v27 = vadd.f32 %v307_v26, %v246_v24 }
 0x128   :  { %v315_v28 = vadd.f32 %v1419_v25, %v308_v27  ;;  %v248_v29 = vpop.f32.mrf.mxu0 }
 0x12a   :  { %1422 = vtanh.f32 %v315_v28 }
 0x12d   :  { %v309_v30 = vpop.f32.mrf.mxu1 }
 0x130   :  { %v1423_v31 = vpop.eup %1422 }
 0x131   :  { %v352_v32 = vpack.c.bf16 %v1423_v31, %v1423_v31 }
 0x133   :  { %1273 = vmatmul.msk.bf16.vlgmr.msra.gmra.mxu3 %vm365_vm0, %v352_v32 }
 0x134   :  { %663 = vmatpush.bf16.msra.mxu3 %v1603_v38 }
 0x138   :  { %664 = vmatpush.bf16.msra.mxu3 %v1642_v15 }
 0x143   :  { %1307 = vmatmul.msk.bf16.vlgmr.msrb.gmra.mxu3 %vm1306_vm2, %v1475_v34 }
 0x144   :  { %772 = vmatpush.bf16.msrb.mxu3 %v1603_v38 }
 0x148   :  { %773 = vmatpush.bf16.msrb.mxu3 %v1642_v15 }
 0x1b6   :  { %v378_v35 = vpop.f32.mrf.mxu3 }
 0x1be   :  { %v380_v37 = vpop.f32.mrf.mxu3 }
 0x1c6   :  { %v439_v41 = vpop.f32.mrf.mxu3 }
 0x1c7   :  { %v440_v42 = vadd.f32 %v439_v41, %v378_v35 }
 0x1c9   :  { %v446_v43 = vadd.f32 %v1722_v40, %v440_v42 }
 0x1cb   :  { %467 = vrot.lane.b32.xlu2 %v446_v43, %s1476_s29  ;;  %v1308_v45 = vmul.f32 -1.442695, %v446_v43 }
 0x1cd   :  { %1424 = vpow2.f32 %v1308_v45 }
 0x1ce   :  { %v441_v44 = vpop.f32.mrf.mxu3 }
 0x1d3   :  { %484 = vrot.lane.b32.xlu2 %v1423_v31, %s1476_s29  ;;  %v1425_v46 = vpop.eup %1424 }
 0x1d4   :  { %v450_v47 = vadd.f32 1.0, %v1425_v46 }
 0x1d6   :  { %1426 = vrcp.f32 %v450_v47  ;;  %v462_v53 = vand.u32 2147483648, %v450_v47  ;;  %vm456_vm4 = vweird.f32 %v450_v47  ;;  %v460_v54 = vand.u32 2147483647, %v450_v47 }
 0x1d8   :  { %v463_v56 = vor.u32 1.1754944e-38, %v462_v53  ;;  %vm461_vm6 = vcmp.eq.f32.partialorder %v460_v54, 8.507059e+37 }
 0x1dc   :  { %v1427_v48 = vpop.eup %1426 }
 0x1dd   :  { %v452_v49 = vmul.f32 %v1427_v48, %v450_v47  ;;  %vm457_vm3 = vweird.f32 %v1427_v48 }
 0x1de   :  { %vm458_vm5 = vmor %vm456_vm4, %vm457_vm3 }
 0x1df   :  { %v453_v50 = vsub.f32 1.0, %v452_v49 }
 0x1e1   :  { %v454_v51 = vmul.f32 %v1427_v48, %v453_v50 }
 0x1e3   :  { %v455_v52 = vadd.f32 %v1427_v48, %v454_v51 }
 0x1e5   :  { %v459_v55 = vsel %vm458_vm5, %v1427_v48, %v455_v52 }
 0x1e6   :  { %v464_v58 = vsel %vm461_vm6, %v463_v56, %v459_v55 }
 0x1e7   :  { %v477_v2 = vsub.f32 1.0, %v464_v58 }
 0x225   :  { %v468_v57 = vpop.permute.xlu2 %467 }
 0x226   :  { %v470_v59 = vmul.f32 %v468_v57, %v464_v58 }
 0x228   :  { %472 = vrot.lane.b32.xlu0 %v470_v59, %s1477_s8 }
 0x22d   :  { %v485_v1 = vpop.permute.xlu2 %484 }
 0x22e   :  { %v487_v4 = vmul.f32 %v485_v1, %v464_v58 }
 0x29a   :  { %v473_v60 = vpop.permute.xlu0 %472 }
 0x29b   :  { %v475_v61 = vadd.f32 %v473_v60, %v446_v43 }
 0x29d   :  { %1428 = vtanh.f32 %v475_v61 }
 0x2a3   :  { %v1429_v62 = vpop.eup %1428 }
 0x2a4   :  { %479 = vrot.lane.b32.xlu1 %v1429_v62, %s1478_s30 }
 0x316   :  { %v480_v3 = vpop.permute.xlu1 %479 }
 0x317   :  { %v482_v5 = vmul.f32 %v480_v3, %v477_v2 }
 0x319   :  { %v1747_v6 = vadd.f32 %v487_v4, %v482_v5 }
 0x31b   :  { %v489_v7 = vpack.c.bf16 %v1747_v6, %v1747_v6 }
 0x31d   :  { %494 = vrot.lane.b32.xlu0 %v489_v7, %s1478_s30 }
 0x38f   :  { %v495_v8 = vpop.permute.xlu0 %494 }
 0x390   :  { %1317 = vmatmul.msk.bf16.vlgmr.msra.gmra.mxu2 %vm365_vm0, %v495_v8 }
 0x391   :  { %670 = vmatpush.bf16.msra.mxu2 %v1647_v16 }
 0x395   :  { %671 = vmatpush.bf16.msra.mxu2 %v1655_v17 }
 0x399   :  { %672 = vmatpush.bf16.msra.mxu2 %v1662_v18 }
 0x39d   :  { %673 = vmatpush.bf16.msra.mxu2 %v1669_v19 }
 0x3a0   :  { %1320 = vmatmul.msk.bf16.vlgmr.msrb.gmra.mxu2 %vm365_vm0, %v495_v8 }
 0x3a1   :  { %674 = vmatpush.bf16.msra.mxu2 %v1676_v20 }
 0x3a5   :  { %675 = vmatpush.bf16.msra.mxu2 %v1682_v21 }
 0x3a9   :  { %676 = vmatpush.bf16.msra.mxu2 %v1689_v22 }
 0x3ad   :  { %677 = vmatpush.bf16.msra.mxu2 %v1696_v23 }
 0x3b1   :  { %888 = vmatpush.bf16.msrb.mxu2 %v1647_v16 }
 0x3b5   :  { %889 = vmatpush.bf16.msrb.mxu2 %v1655_v17 }
 0x3b9   :  { %890 = vmatpush.bf16.msrb.mxu2 %v1662_v18 }
 0x3bd   :  { %891 = vmatpush.bf16.msrb.mxu2 %v1669_v19 }
 0x3c1   :  { %892 = vmatpush.bf16.msrb.mxu2 %v1676_v20 }
 0x3c5   :  { %893 = vmatpush.bf16.msrb.mxu2 %v1682_v21 }
 0x3c9   :  { %894 = vmatpush.bf16.msrb.mxu2 %v1689_v22 }
 0x3cd   :  { %895 = vmatpush.bf16.msrb.mxu2 %v1696_v23 }
 0x413   :  { %v520_v9 = vpop.f32.mrf.mxu2 }
 0x414   :  { %v521_v10 = vadd.f32 %v1777_v39, %v520_v9 }
 0x416   :  { %1318 = vst [vmem:[%s1933_s11 + $0x8] sm:$0xff] %v521_v10  ;;  %526 = vmax.xlane.f32.xlu1 %v521_v10 }
 0x41b   :  { %v522_v11 = vpop.f32.mrf.mxu2 }
 0x423   :  { %v557_v12 = vpop.f32.mrf.mxu2 }
 0x42b   :  { %v559_v13 = vpop.f32.mrf.mxu2 }
 0x489   :  { %v527_v14 = vpop.xlane.xlu1 %526 }
 0x48a   :  { %vm528_vm7 = vcmp.eq.f32.partialorder %v521_v10, %v527_v14 }
 0x48b   :  { %v529_v24 = vsel %vm528_vm7, %v1595_v36, 128 }
 0x48c   :  { %v531_v25 = vshra.s32 %v529_v24, 16  ;;  %v530_v27 = vand.u32 65535, %v529_v24 }
 0x48e   :  { %v533_v26 = vcvt.s32.f32 %v531_v25  ;;  %v532_v29 = vcvt.s32.f32 %v530_v27 }
 0x490   :  { %534 = vmin.xlane.f32.xlu2 %v533_v26 }
 0x503   :  { %v535_v28 = vpop.xlane.xlu2 %534 }
 0x504   :  { %vm536_vm8 = vcmp.eq.f32.partialorder %v533_v26, %v535_v28  ;;  %v541_v31 = vcvt.f32.s32 %v535_v28 }
 0x505   :  { %v537_v30 = vsel %vm536_vm8, %v532_v29, inf }
 0x506   :  { %538 = vmin.xlane.f32.xlu0 %v537_v30  ;;  %v542_v33 = vshll.u32 %v541_v31, 16 }
 0x579   :  { %v539_v32 = vpop.xlane.xlu0 %538 }
 0x57a   :  { %v540_v35 = vcvt.f32.s32 %v539_v32 }
 0x57c   :  { %v543_v37 = vadd.s32 %v542_v33, %v540_v35 }
 0x57e   :  { %vm544_vm9 = vcmp.eq.s32.totalorder %v1595_v36, %v543_v37 }
 0x57f   :  { %vm1321_vm10 = vmpackc.low %vm544_vm9, %vm544_vm9 }
 0x580   :  { %1322 = vmatmul.msk.bf16.vlgmr.msrb.gmra.mxu0 %vm1321_vm10, %v1475_v34 }
 0x581   :  { %997 = vmatpush.bf16.msrb.mxu0 %v1647_v16 }
 0x585   :  { %998 = vmatpush.bf16.msrb.mxu0 %v1655_v17 }
 0x589   :  { %999 = vmatpush.bf16.msrb.mxu0 %v1662_v18 }
 0x58d   :  { %1000 = vmatpush.bf16.msrb.mxu0 %v1669_v19 }
 0x591   :  { %1001 = vmatpush.bf16.msrb.mxu0 %v1676_v20 }
 0x595   :  { %1002 = vmatpush.bf16.msrb.mxu0 %v1682_v21 }
 0x599   :  { %1003 = vmatpush.bf16.msrb.mxu0 %v1689_v22 }
 0x59d   :  { %1004 = vmatpush.bf16.msrb.mxu0 %v1696_v23 }
 0x5fd   :  { %v570_v41 = vpop.f32.mrf.mxu0 }
 0x5fe   :  { %v571_v42 = vadd.f32 %v570_v41, %v557_v12 }
 0x600   :  { %v574_v43 = vadd.f32 %v1722_v40, %v571_v42 }
 0x602   :  { %595 = vrot.lane.b32.xlu2 %v574_v43, %s1476_s29  ;;  %v1323_v45 = vmul.f32 -1.442695, %v574_v43 }
 0x604   :  { %1430 = vpow2.f32 %v1323_v45 }
 0x605   :  { %v572_v44 = vpop.f32.mrf.mxu0 }
 0x60a   :  { %v1431_v46 = vpop.eup %1430 }
 0x60b   :  { %v578_v47 = vadd.f32 1.0, %v1431_v46 }
 0x60d   :  { %1432 = vrcp.f32 %v578_v47  ;;  %v590_v53 = vand.u32 2147483648, %v578_v47  ;;  %vm584_vm12 = vweird.f32 %v578_v47  ;;  %v588_v54 = vand.u32 2147483647, %v578_v47 }
 0x60f   :  { %v591_v56 = vor.u32 1.1754944e-38, %v590_v53  ;;  %vm589_vm14 = vcmp.eq.f32.partialorder %v588_v54, 8.507059e+37 }
 0x613   :  { %v1433_v48 = vpop.eup %1432 }
 0x614   :  { %v580_v49 = vmul.f32 %v1433_v48, %v578_v47  ;;  %vm585_vm11 = vweird.f32 %v1433_v48 }
 0x615   :  { %vm586_vm13 = vmor %vm584_vm12, %vm585_vm11 }
 0x616   :  { %v581_v50 = vsub.f32 1.0, %v580_v49 }
 0x618   :  { %v582_v51 = vmul.f32 %v1433_v48, %v581_v50 }
 0x61a   :  { %v583_v52 = vadd.f32 %v1433_v48, %v582_v51 }
 0x61c   :  { %v587_v55 = vsel %vm586_vm13, %v1433_v48, %v583_v52 }
 0x61d   :  { %v592_v58 = vsel %vm589_vm14, %v591_v56, %v587_v55 }
 0x61e   :  { %v605_v1 = vsub.f32 1.0, %v592_v58  ;;  %v611_v3 = vmul.f32 %v592_v58, %v1747_v6 }
 0x65c   :  { %v596_v57 = vpop.permute.xlu2 %595 }
 0x65d   :  { %v598_v59 = vmul.f32 %v596_v57, %v592_v58 }
 0x65f   :  { %600 = vrot.lane.b32.xlu1 %v598_v59, %s1477_s8 }
 0x6d1   :  { %v601_v60 = vpop.permute.xlu1 %600 }
 0x6d2   :  { %v603_v61 = vadd.f32 %v601_v60, %v574_v43 }
 0x6d4   :  { %1434 = vtanh.f32 %v603_v61 }
 0x6da   :  { %v1435_v62 = vpop.eup %1434 }
 0x6db   :  { %607 = vrot.lane.b32.xlu0 %v1435_v62, %s1478_s30 }
 0x74d   :  { %v608_v2 = vpop.permute.xlu0 %607 }
 0x74e   :  { %v610_v4 = vmul.f32 %v608_v2, %v605_v1 }
 0x750   :  { %v1799_v5 = vadd.f32 %v611_v3, %v610_v4 }
 0x752   :  { %v613_v7 = vpack.c.bf16 %v1799_v5, %v1799_v5 }
 0x754   :  { %615 = vrot.lane.b32.xlu2 %v613_v7, %s1478_s30 }
 0x7ae   :  { %v616_v8 = vpop.permute.xlu2 %615 }
 0x7af   :  { %1324 = vmatmul.msk.bf16.vlgmr.msrb.gmra.mxu1 %vm365_vm0, %v616_v8  ;;  %1327 = vmatmul.msk.bf16.vlgmr.msra.gmra.mxu3 %vm365_vm0, %v616_v8 }
 0x7b0   :  { %844 = vmatpush.bf16.msrb.mxu1 %v1732_v63  ;;  %881 = vmatpush.bf16.msra.mxu3 %v1603_v38 }
 0x7b4   :  { %845 = vmatpush.bf16.msrb.mxu1 %v1738_v0  ;;  %882 = vmatpush.bf16.msra.mxu3 %v1642_v15 }
 0x82c   :  { %v629_v6 = vpop.f32.mrf.mxu1 }
 0x82d   :  { %v630_v9 = vadd.f32 %v1777_v39, %v629_v6 }
 0x82f   :  { %1325 = vst [vmem:[%s1933_s11 + $0x10] sm:$0xff] %v630_v9  ;;  %635 = vmax.xlane.f32.xlu1 %v630_v9 }
 0x832   :  { %v666_v10 = vpop.f32.mrf.mxu3 }
 0x834   :  { %v631_v11 = vpop.f32.mrf.mxu1 }
 0x83a   :  { %v668_v12 = vpop.f32.mrf.mxu3 }
 0x8a2   :  { %v636_v13 = vpop.xlane.xlu1 %635 }
 0x8a3   :  { %vm637_vm15 = vcmp.eq.f32.partialorder %v630_v9, %v636_v13 }
 0x8a4   :  { %v638_v14 = vsel %vm637_vm15, %v1595_v36, 128 }
 0x8a5   :  { %v640_v24 = vshra.s32 %v638_v14, 16  ;;  %v639_v26 = vand.u32 65535, %v638_v14 }
 0x8a7   :  { %v642_v25 = vcvt.s32.f32 %v640_v24  ;;  %v641_v28 = vcvt.s32.f32 %v639_v26 }
 0x8a9   :  { %643 = vmin.xlane.f32.xlu0 %v642_v25 }
 0x91c   :  { %v644_v27 = vpop.xlane.xlu0 %643 }
 0x91d   :  { %vm645_vm1 = vcmp.eq.f32.partialorder %v642_v25, %v644_v27  ;;  %v650_v30 = vcvt.f32.s32 %v644_v27 }
 0x91e   :  { %v646_v29 = vsel %vm645_vm1, %v641_v28, inf }
 0x91f   :  { %647 = vmin.xlane.f32.xlu2 %v646_v29  ;;  %v651_v32 = vshll.u32 %v650_v30, 16 }
 0x992   :  { %v648_v31 = vpop.xlane.xlu2 %647 }
 0x993   :  { %v649_v33 = vcvt.f32.s32 %v648_v31 }
 0x995   :  { %v652_v35 = vadd.s32 %v651_v32, %v649_v33 }
 0x997   :  { %vm653_vm2 = vcmp.eq.s32.totalorder %v1595_v36, %v652_v35 }
 0x998   :  { %vm1328_vm3 = vmpackc.low %vm653_vm2, %vm653_vm2 }
 0x999   :  { %1329 = vmatmul.msk.bf16.vlgmr.msra.gmra.mxu2 %vm1328_vm3, %v1475_v34 }
 0x99a   :  { %1106 = vmatpush.bf16.msra.mxu2 %v1647_v16 }
 0x99e   :  { %1107 = vmatpush.bf16.msra.mxu2 %v1655_v17 }
 0x9a2   :  { %1108 = vmatpush.bf16.msra.mxu2 %v1662_v18 }
 0x9a6   :  { %1109 = vmatpush.bf16.msra.mxu2 %v1669_v19 }
 0x9aa   :  { %1110 = vmatpush.bf16.msra.mxu2 %v1676_v20 }
 0x9ae   :  { %1111 = vmatpush.bf16.msra.mxu2 %v1682_v21 }
 0x9b2   :  { %1112 = vmatpush.bf16.msra.mxu2 %v1689_v22 }
 0x9b6   :  { %1113 = vmatpush.bf16.msra.mxu2 %v1696_v23 }
 0xa1c   :  { %v679_v37 = vpop.f32.mrf.mxu2 }
 0xa1d   :  { %v680_v41 = vadd.f32 %v679_v37, %v666_v10 }
 0xa1f   :  { %v683_v42 = vadd.f32 %v1722_v40, %v680_v41 }
 0xa21   :  { %704 = vrot.lane.b32.xlu1 %v683_v42, %s1476_s29  ;;  %v1330_v17 = vmul.f32 -1.442695, %v683_v42 }
 0xa23   :  { %1436 = vpow2.f32 %v1330_v17 }
 0xa24   :  { %v681_v16 = vpop.f32.mrf.mxu2 }
 0xa29   :  { %v1437_v18 = vpop.eup %1436 }
 0xa2a   :  { %v687_v43 = vadd.f32 1.0, %v1437_v18 }
 0xa2c   :  { %1438 = vrcp.f32 %v687_v43  ;;  %v699_v22 = vand.u32 2147483648, %v687_v43  ;;  %vm693_vm5 = vweird.f32 %v687_v43  ;;  %v697_v23 = vand.u32 2147483647, %v687_v43 }
 0xa2e   :  { %v700_v47 = vor.u32 1.1754944e-38, %v699_v22  ;;  %vm698_vm7 = vcmp.eq.f32.partialorder %v697_v23, 8.507059e+37 }
 0xa32   :  { %v1439_v19 = vpop.eup %1438 }
 0xa33   :  { %v689_v20 = vmul.f32 %v1439_v19, %v687_v43  ;;  %vm694_vm4 = vweird.f32 %v1439_v19 }
 0xa34   :  { %vm695_vm6 = vmor %vm693_vm5, %vm694_vm4 }
 0xa35   :  { %v690_v44 = vsub.f32 1.0, %v689_v20 }
 0xa37   :  { %v691_v21 = vmul.f32 %v1439_v19, %v690_v44 }
 0xa39   :  { %v692_v45 = vadd.f32 %v1439_v19, %v691_v21 }
 0xa3b   :  { %v696_v46 = vsel %vm695_vm6, %v1439_v19, %v692_v45 }
 0xa3c   :  { %v701_v49 = vsel %vm698_vm7, %v700_v47, %v696_v46 }
 0xa3d   :  { %v714_v54 = vsub.f32 1.0, %v701_v49  ;;  %v720_v56 = vmul.f32 %v701_v49, %v1799_v5 }
 0xa93   :  { %v705_v48 = vpop.permute.xlu1 %704 }
 0xa94   :  { %v707_v50 = vmul.f32 %v705_v48, %v701_v49 }
 0xa96   :  { %709 = vrot.lane.b32.xlu0 %v707_v50, %s1477_s8 }
 0xb08   :  { %v710_v51 = vpop.permute.xlu0 %709 }
 0xb09   :  { %v712_v52 = vadd.f32 %v710_v51, %v683_v42 }
 0xb0b   :  { %1440 = vtanh.f32 %v712_v52 }
 0xb11   :  { %v1441_v53 = vpop.eup %1440 }
 0xb12   :  { %716 = vrot.lane.b32.xlu2 %v1441_v53, %s1478_s30 }
 0xb6c   :  { %v717_v55 = vpop.permute.xlu2 %716 }
 0xb6d   :  { %v719_v57 = vmul.f32 %v717_v55, %v714_v54 }
 0xb6f   :  { %v1830_v58 = vadd.f32 %v720_v56, %v719_v57 }
 0xb71   :  { %v722_v59 = vpack.c.bf16 %v1830_v58, %v1830_v58 }
 0xb73   :  { %724 = vrot.lane.b32.xlu0 %v722_v59, %s1478_s30 }
 0xbe5   :  { %v725_v60 = vpop.permute.xlu0 %724 }
 0xbe6   :  { %1331 = vmatmul.msk.bf16.vlgmr.msra.gmra.mxu1 %vm365_vm0, %v725_v60  ;;  %1334 = vmatmul.msk.bf16.vlgmr.msrb.gmra.mxu3 %vm365_vm0, %v725_v60 }
 0xbe7   :  { %953 = vmatpush.bf16.msra.mxu1 %v1732_v63  ;;  %990 = vmatpush.bf16.msrb.mxu3 %v1603_v38 }
 0xbeb   :  { %954 = vmatpush.bf16.msra.mxu1 %v1738_v0  ;;  %991 = vmatpush.bf16.msrb.mxu3 %v1642_v15 }
 0xc63   :  { %v738_v61 = vpop.f32.mrf.mxu1 }
 0xc64   :  { %v739_v62 = vadd.f32 %v1777_v39, %v738_v61 }
 0xc66   :  { %1332 = vst [vmem:[%s1933_s11 + $0x18] sm:$0xff] %v739_v62  ;;  %744 = vmax.xlane.f32.xlu1 %v739_v62 }
 0xc69   :  { %v775_v1 = vpop.f32.mrf.mxu3 }
 0xc6b   :  { %v740_v2 = vpop.f32.mrf.mxu1 }
 0xc71   :  { %v777_v3 = vpop.f32.mrf.mxu3 }
 0xcd9   :  { %v745_v4 = vpop.xlane.xlu1 %744 }
 0xcda   :  { %vm746_vm8 = vcmp.eq.f32.partialorder %v739_v62, %v745_v4 }
 0xcdb   :  { %v747_v5 = vsel %vm746_vm8, %v1595_v36, 128 }
 0xcdc   :  { %v749_v7 = vshra.s32 %v747_v5, 16  ;;  %v748_v6 = vand.u32 65535, %v747_v5 }
 0xcde   :  { %v751_v8 = vcvt.s32.f32 %v749_v7  ;;  %v750_v10 = vcvt.s32.f32 %v748_v6 }
 0xce0   :  { %752 = vmin.xlane.f32.xlu2 %v751_v8 }
 0xd53   :  { %v753_v9 = vpop.xlane.xlu2 %752 }
 0xd54   :  { %vm754_vm9 = vcmp.eq.f32.partialorder %v751_v8, %v753_v9  ;;  %v759_v12 = vcvt.f32.s32 %v753_v9 }
 0xd55   :  { %v755_v11 = vsel %vm754_vm9, %v750_v10, inf }
 0xd56   :  { %756 = vmin.xlane.f32.xlu0 %v755_v11  ;;  %v760_v14 = vshll.u32 %v759_v12, 16 }
 0xdc9   :  { %v757_v13 = vpop.xlane.xlu0 %756 }
 0xdca   :  { %v758_v24 = vcvt.f32.s32 %v757_v13 }
 0xdcc   :  { %v761_v25 = vadd.s32 %v760_v14, %v758_v24 }
 0xdce   :  { %vm762_vm10 = vcmp.eq.s32.totalorder %v1595_v36, %v761_v25 }
 0xdcf   :  { %vm1335_vm11 = vmpackc.low %vm762_vm10, %vm762_vm10 }
 0xdd0   :  { %1336 = vmatmul.msk.bf16.vlgmr.msra.gmra.mxu0 %vm1335_vm11, %v1475_v34 }
 0xe4d   :  { %v788_v26 = vpop.f32.mrf.mxu0 }
 0xe4e   :  { %v789_v27 = vadd.f32 %v788_v26, %v775_v1 }
 0xe50   :  { %v792_v28 = vadd.f32 %v1722_v40, %v789_v27 }
 0xe52   :  { %813 = vrot.lane.b32.xlu1 %v792_v28, %s1476_s29  ;;  %v1337_v30 = vmul.f32 -1.442695, %v792_v28 }
 0xe54   :  { %1442 = vpow2.f32 %v1337_v30 }
 0xe55   :  { %v790_v29 = vpop.f32.mrf.mxu0 }
 0xe5a   :  { %v1443_v31 = vpop.eup %1442 }
 0xe5b   :  { %v796_v32 = vadd.f32 1.0, %v1443_v31 }
 0xe5d   :  { %1444 = vrcp.f32 %v796_v32  ;;  %v808_v16 = vand.u32 2147483648, %v796_v32  ;;  %vm802_vm13 = vweird.f32 %v796_v32  ;;  %v806_v17 = vand.u32 2147483647, %v796_v32 }
 0xe5f   :  { %v809_v43 = vor.u32 1.1754944e-38, %v808_v16  ;;  %vm807_vm15 = vcmp.eq.f32.partialorder %v806_v17, 8.507059e+37 }
 0xe63   :  { %v1445_v33 = vpop.eup %1444 }
 0xe64   :  { %v798_v35 = vmul.f32 %v1445_v33, %v796_v32  ;;  %vm803_vm12 = vweird.f32 %v1445_v33 }
 0xe65   :  { %vm804_vm14 = vmor %vm802_vm13, %vm803_vm12 }
 0xe66   :  { %v799_v37 = vsub.f32 1.0, %v798_v35 }
 0xe68   :  { %v800_v41 = vmul.f32 %v1445_v33, %v799_v37 }
 0xe6a   :  { %v801_v42 = vadd.f32 %v1445_v33, %v800_v41 }
 0xe6c   :  { %v805_v18 = vsel %vm804_vm14, %v1445_v33, %v801_v42 }
 0xe6d   :  { %v810_v20 = vsel %vm807_vm15, %v809_v43, %v805_v18 }
 0xe6e   :  { %v823_v23 = vsub.f32 1.0, %v810_v20  ;;  %v829_v47 = vmul.f32 %v810_v20, %v1830_v58 }
 0xec4   :  { %v814_v19 = vpop.permute.xlu1 %813 }
 0xec5   :  { %v816_v44 = vmul.f32 %v814_v19, %v810_v20 }
 0xec7   :  { %818 = vrot.lane.b32.xlu2 %v816_v44, %s1477_s8 }
 0xf21   :  { %v819_v21 = vpop.permute.xlu2 %818 }
 0xf22   :  { %v821_v45 = vadd.f32 %v819_v21, %v792_v28 }
 0xf24   :  { %1446 = vtanh.f32 %v821_v45 }
 0xf2a   :  { %v1447_v22 = vpop.eup %1446 }
 0xf2b   :  { %825 = vrot.lane.b32.xlu0 %v1447_v22, %s1478_s30 }
 0xf9d   :  { %v826_v46 = vpop.permute.xlu0 %825 }
 0xf9e   :  { %v828_v48 = vmul.f32 %v826_v46, %v823_v23 }
 0xfa0   :  { %v1853_v49 = vadd.f32 %v829_v47, %v828_v48 }
 0xfa2   :  { %v831_v50 = vpack.c.bf16 %v1853_v49, %v1853_v49 }
 0xfa4   :  { %833 = vrot.lane.b32.xlu1 %v831_v50, %s1478_s30 }
0x1016   :  { %v834_v51 = vpop.permute.xlu1 %833 }
0x1017   :  { %1338 = vmatmul.msk.bf16.vlgmr.msrb.gmra.mxu1 %vm365_vm0, %v834_v51  ;;  %1341 = vmatmul.msk.bf16.vlgmr.msra.gmra.mxu3 %vm365_vm0, %v834_v51 }
0x1018   :  { %1062 = vmatpush.bf16.msrb.mxu1 %v1732_v63  ;;  %1099 = vmatpush.bf16.msra.mxu3 %v1603_v38 }
0x101c   :  { %1063 = vmatpush.bf16.msrb.mxu1 %v1738_v0  ;;  %1100 = vmatpush.bf16.msra.mxu3 %v1642_v15 }
0x1094   :  { %v847_v52 = vpop.f32.mrf.mxu1 }
0x1095   :  { %v848_v53 = vadd.f32 %v1777_v39, %v847_v52 }
0x1097   :  { %1339 = vst [vmem:[%s1933_s11 + $0x20] sm:$0xff] %v848_v53  ;;  %853 = vmax.xlane.f32.xlu0 %v848_v53 }
0x109a   :  { %v884_v54 = vpop.f32.mrf.mxu3 }
0x109c   :  { %v849_v55 = vpop.f32.mrf.mxu1 }
0x10a2   :  { %v886_v56 = vpop.f32.mrf.mxu3 }
0x110a   :  { %v854_v57 = vpop.xlane.xlu0 %853 }
0x110b   :  { %vm855_vm1 = vcmp.eq.f32.partialorder %v848_v53, %v854_v57 }
0x110c   :  { %v856_v58 = vsel %vm855_vm1, %v1595_v36, 128 }
0x110d   :  { %v858_v38 = vshra.s32 %v856_v58, 16  ;;  %v857_v60 = vand.u32 65535, %v856_v58 }
0x110f   :  { %v860_v59 = vcvt.s32.f32 %v858_v38  ;;  %v859_v61 = vcvt.s32.f32 %v857_v60 }
0x1111   :  { %861 = vmin.xlane.f32.xlu2 %v860_v59 }
0x1184   :  { %v862_v15 = vpop.xlane.xlu2 %861 }
0x1185   :  { %vm863_vm2 = vcmp.eq.f32.partialorder %v860_v59, %v862_v15  ;;  %v868_v1 = vcvt.f32.s32 %v862_v15 }
0x1186   :  { %v864_v62 = vsel %vm863_vm2, %v859_v61, inf }
0x1187   :  { %865 = vmin.xlane.f32.xlu1 %v864_v62  ;;  %v869_v3 = vshll.u32 %v868_v1, 16 }
0x11fa   :  { %v866_v2 = vpop.xlane.xlu1 %865 }
0x11fb   :  { %v867_v4 = vcvt.f32.s32 %v866_v2 }
0x11fd   :  { %v870_v5 = vadd.s32 %v869_v3, %v867_v4 }
0x11ff   :  { %vm871_vm3 = vcmp.eq.s32.totalorder %v1595_v36, %v870_v5 }
0x1200   :  { %vm1342_vm4 = vmpackc.low %vm871_vm3, %vm871_vm3 }
0x1201   :  { %1343 = vmatmul.msk.bf16.vlgmr.msrb.gmra.mxu2 %vm1342_vm4, %v1475_v34 }
0x1284   :  { %v897_v7 = vpop.f32.mrf.mxu2 }
0x1285   :  { %v898_v8 = vadd.f32 %v897_v7, %v884_v54 }
0x1287   :  { %v901_v6 = vadd.f32 %v1722_v40, %v898_v8 }
0x1289   :  { %922 = vrot.lane.b32.xlu0 %v901_v6, %s1476_s29  ;;  %v1344_v10 = vmul.f32 -1.442695, %v901_v6 }
0x128b   :  { %1448 = vpow2.f32 %v1344_v10 }
0x128c   :  { %v899_v9 = vpop.f32.mrf.mxu2 }
0x1291   :  { %v1449_v11 = vpop.eup %1448 }
0x1292   :  { %v905_v12 = vadd.f32 1.0, %v1449_v11 }
0x1294   :  { %1450 = vrcp.f32 %v905_v12  ;;  %v917_v27 = vand.u32 2147483648, %v905_v12  ;;  %vm911_vm6 = vweird.f32 %v905_v12  ;;  %v915_v28 = vand.u32 2147483647, %v905_v12 }
0x1296   :  { %v918_v30 = vor.u32 1.1754944e-38, %v917_v27  ;;  %vm916_vm8 = vcmp.eq.f32.partialorder %v915_v28, 8.507059e+37 }
0x129a   :  { %v1451_v13 = vpop.eup %1450 }
0x129b   :  { %v907_v14 = vmul.f32 %v1451_v13, %v905_v12  ;;  %vm912_vm5 = vweird.f32 %v1451_v13 }
0x129c   :  { %vm913_vm7 = vmor %vm911_vm6, %vm912_vm5 }
0x129d   :  { %v908_v24 = vsub.f32 1.0, %v907_v14 }
0x129f   :  { %v909_v25 = vmul.f32 %v1451_v13, %v908_v24 }
0x12a1   :  { %v910_v26 = vadd.f32 %v1451_v13, %v909_v25 }
0x12a3   :  { %v914_v29 = vsel %vm913_vm7, %v1451_v13, %v910_v26 }
0x12a4   :  { %v919_v32 = vsel %vm916_vm8, %v918_v30, %v914_v29 }
0x12a5   :  { %v932_v42 = vsub.f32 1.0, %v919_v32  ;;  %v938_v17 = vmul.f32 %v919_v32, %v1853_v49 }
0x12fb   :  { %v923_v31 = vpop.permute.xlu0 %922 }
0x12fc   :  { %v925_v33 = vmul.f32 %v923_v31, %v919_v32 }
0x12fe   :  { %927 = vrot.lane.b32.xlu2 %v925_v33, %s1477_s8 }
0x1358   :  { %v928_v35 = vpop.permute.xlu2 %927 }
0x1359   :  { %v930_v37 = vadd.f32 %v928_v35, %v901_v6 }
0x135b   :  { %1452 = vtanh.f32 %v930_v37 }
0x1361   :  { %v1453_v41 = vpop.eup %1452 }
0x1362   :  { %934 = vrot.lane.b32.xlu1 %v1453_v41, %s1478_s30 }
0x13d4   :  { %v935_v16 = vpop.permute.xlu1 %934 }
0x13d5   :  { %v937_v18 = vmul.f32 %v935_v16, %v932_v42 }
0x13d7   :  { %v1876_v43 = vadd.f32 %v938_v17, %v937_v18 }
0x13d9   :  { %v940_v19 = vpack.c.bf16 %v1876_v43, %v1876_v43 }
0x13db   :  { %942 = vrot.lane.b32.xlu0 %v940_v19, %s1478_s30 }
0x144d   :  { %v943_v20 = vpop.permute.xlu0 %942 }
0x144e   :  { %1345 = vmatmul.msk.bf16.vlgmr.msra.gmra.mxu1 %vm365_vm0, %v943_v20  ;;  %1348 = vmatmul.msk.bf16.vlgmr.msrb.gmra.mxu3 %vm365_vm0, %v943_v20 }
0x144f   :  { %1171 = vmatpush.bf16.msra.mxu1 %v1732_v63 }
0x1453   :  { %1172 = vmatpush.bf16.msra.mxu1 %v1738_v0 }
0x14cb   :  { %v956_v44 = vpop.f32.mrf.mxu1 }
0x14cc   :  { %v957_v21 = vadd.f32 %v1777_v39, %v956_v44 }
0x14ce   :  { %1346 = vst [vmem:[%s1933_s11 + $0x28] sm:$0xff] %v957_v21  ;;  %962 = vmax.xlane.f32.xlu2 %v957_v21 }
0x14d1   :  { %v993_v45 = vpop.f32.mrf.mxu3 }
0x14d3   :  { %v958_v22 = vpop.f32.mrf.mxu1 }
0x14d9   :  { %v995_v23 = vpop.f32.mrf.mxu3 }
0x1541   :  { %v963_v46 = vpop.xlane.xlu2 %962 }
0x1542   :  { %vm964_vm9 = vcmp.eq.f32.partialorder %v957_v21, %v963_v46 }
0x1543   :  { %v965_v47 = vsel %vm964_vm9, %v1595_v36, 128 }
0x1544   :  { %v967_v48 = vshra.s32 %v965_v47, 16  ;;  %v966_v63 = vand.u32 65535, %v965_v47 }
0x1546   :  { %v969_v49 = vcvt.s32.f32 %v967_v48  ;;  %v968_v50 = vcvt.s32.f32 %v966_v63 }
0x1548   :  { %970 = vmin.xlane.f32.xlu0 %v969_v49 }
0x15bb   :  { %v971_v0 = vpop.xlane.xlu0 %970 }
0x15bc   :  { %vm972_vm10 = vcmp.eq.f32.partialorder %v969_v49, %v971_v0  ;;  %v977_v52 = vcvt.f32.s32 %v971_v0 }
0x15bd   :  { %v973_v51 = vsel %vm972_vm10, %v968_v50, inf }
0x15be   :  { %974 = vmin.xlane.f32.xlu1 %v973_v51  ;;  %v978_v54 = vshll.u32 %v977_v52, 16 }
0x1631   :  { %v975_v53 = vpop.xlane.xlu1 %974 }
0x1632   :  { %v976_v55 = vcvt.f32.s32 %v975_v53 }
0x1634   :  { %v979_v56 = vadd.s32 %v978_v54, %v976_v55 }
0x1636   :  { %vm980_vm11 = vcmp.eq.s32.totalorder %v1595_v36, %v979_v56 }
0x1637   :  { %vm1349_vm12 = vmpackc.low %vm980_vm11, %vm980_vm11 }
0x1638   :  { %1350 = vmatmul.msk.bf16.vlgmr.msrb.gmra.mxu0 %vm1349_vm12, %v1475_v34 }
0x16b5   :  { %v1006_v57 = vpop.f32.mrf.mxu0 }
0x16b6   :  { %v1007_v58 = vadd.f32 %v1006_v57, %v993_v45 }
0x16b8   :  { %v1010_v38 = vadd.f32 %v1722_v40, %v1007_v58 }
0x16ba   :  { %1031 = vrot.lane.b32.xlu2 %v1010_v38, %s1476_s29  ;;  %v1351_v60 = vmul.f32 -1.442695, %v1010_v38 }
0x16bc   :  { %1454 = vpow2.f32 %v1351_v60 }
0x16bd   :  { %v1008_v59 = vpop.f32.mrf.mxu0 }
0x16c2   :  { %v1455_v15 = vpop.eup %1454 }
0x16c3   :  { %v1014_v61 = vadd.f32 1.0, %v1455_v15 }
0x16c5   :  { %1456 = vrcp.f32 %v1014_v61  ;;  %v1026_v5 = vand.u32 2147483648, %v1014_v61  ;;  %vm1020_vm14 = vweird.f32 %v1014_v61  ;;  %v1024_v7 = vand.u32 2147483647, %v1014_v61 }
0x16c7   :  { %v1027_v6 = vor.u32 1.1754944e-38, %v1026_v5  ;;  %vm1025_vm1 = vcmp.eq.f32.partialorder %v1024_v7, 8.507059e+37 }
0x16cb   :  { %v1457_v62 = vpop.eup %1456 }
0x16cc   :  { %v1016_v1 = vmul.f32 %v1457_v62, %v1014_v61  ;;  %vm1021_vm13 = vweird.f32 %v1457_v62 }
0x16cd   :  { %vm1022_vm15 = vmor %vm1020_vm14, %vm1021_vm13 }
0x16ce   :  { %v1017_v2 = vsub.f32 1.0, %v1016_v1 }
0x16d0   :  { %v1018_v3 = vmul.f32 %v1457_v62, %v1017_v2 }
0x16d2   :  { %v1019_v4 = vadd.f32 %v1457_v62, %v1018_v3 }
0x16d4   :  { %v1023_v8 = vsel %vm1022_vm15, %v1457_v62, %v1019_v4 }
0x16d5   :  { %v1028_v10 = vsel %vm1025_vm1, %v1027_v6, %v1023_v8 }
0x16d6   :  { %v1041_v24 = vsub.f32 1.0, %v1028_v10  ;;  %v1047_v26 = vmul.f32 %v1028_v10, %v1876_v43 }
0x1714   :  { %v1032_v9 = vpop.permute.xlu2 %1031 }
0x1715   :  { %v1034_v11 = vmul.f32 %v1032_v9, %v1028_v10 }
0x1717   :  { %1036 = vrot.lane.b32.xlu0 %v1034_v11, %s1477_s8 }
0x1789   :  { %v1037_v12 = vpop.permute.xlu0 %1036 }
0x178a   :  { %v1039_v13 = vadd.f32 %v1037_v12, %v1010_v38 }
0x178c   :  { %1458 = vtanh.f32 %v1039_v13 }
0x1792   :  { %v1459_v14 = vpop.eup %1458 }
0x1793   :  { %1043 = vrot.lane.b32.xlu1 %v1459_v14, %s1478_s30 }
0x1805   :  { %v1044_v25 = vpop.permute.xlu1 %1043 }
0x1806   :  { %v1046_v27 = vmul.f32 %v1044_v25, %v1041_v24 }
0x1808   :  { %v1897_v28 = vadd.f32 %v1047_v26, %v1046_v27 }
0x180a   :  { %v1049_v29 = vpack.c.bf16 %v1897_v28, %v1897_v28 }
0x180c   :  { %1051 = vrot.lane.b32.xlu2 %v1049_v29, %s1478_s30 }
0x1866   :  { %v1052_v30 = vpop.permute.xlu2 %1051 }
0x1867   :  { %1352 = vmatmul.msk.bf16.vlgmr.msrb.gmra.mxu1 %vm365_vm0, %v1052_v30  ;;  %1355 = vmatmul.msk.bf16.vlgmr.msra.gmra.mxu3 %vm365_vm0, %v1052_v30 }
0x18e4   :  { %v1065_v31 = vpop.f32.mrf.mxu1 }
0x18e5   :  { %v1066_v32 = vadd.f32 %v1777_v39, %v1065_v31 }
0x18e7   :  { %1353 = vst [vmem:[%s1933_s11 + $0x30] sm:$0xff] %v1066_v32  ;;  %1071 = vmax.xlane.f32.xlu0 %v1066_v32 }
0x18ea   :  { %v1102_v33 = vpop.f32.mrf.mxu3 }
0x18ec   :  { %v1067_v35 = vpop.f32.mrf.mxu1 }
0x18f2   :  { %v1104_v37 = vpop.f32.mrf.mxu3 }
0x195a   :  { %v1072_v41 = vpop.xlane.xlu0 %1071 }
0x195b   :  { %vm1073_vm2 = vcmp.eq.f32.partialorder %v1066_v32, %v1072_v41 }
0x195c   :  { %v1074_v42 = vsel %vm1073_vm2, %v1595_v36, 128 }
0x195d   :  { %v1076_v16 = vshra.s32 %v1074_v42, 16  ;;  %v1075_v18 = vand.u32 65535, %v1074_v42 }
0x195f   :  { %v1078_v17 = vcvt.s32.f32 %v1076_v16  ;;  %v1077_v19 = vcvt.s32.f32 %v1075_v18 }
0x1961   :  { %1079 = vmin.xlane.f32.xlu2 %v1078_v17 }
0x19d4   :  { %v1080_v43 = vpop.xlane.xlu2 %1079 }
0x19d5   :  { %vm1081_vm3 = vcmp.eq.f32.partialorder %v1078_v17, %v1080_v43  ;;  %v1086_v44 = vcvt.f32.s32 %v1080_v43 }
0x19d6   :  { %v1082_v20 = vsel %vm1081_vm3, %v1077_v19, inf }
0x19d7   :  { %1083 = vmin.xlane.f32.xlu1 %v1082_v20  ;;  %v1087_v45 = vshll.u32 %v1086_v44, 16 }
0x1a4a   :  { %v1084_v21 = vpop.xlane.xlu1 %1083 }
0x1a4b   :  { %v1085_v22 = vcvt.f32.s32 %v1084_v21 }
0x1a4d   :  { %v1088_v23 = vadd.s32 %v1087_v45, %v1085_v22 }
0x1a4f   :  { %vm1089_vm4 = vcmp.eq.s32.totalorder %v1595_v36, %v1088_v23 }
0x1a50   :  { %vm1356_vm5 = vmpackc.low %vm1089_vm4, %vm1089_vm4 }
0x1a51   :  { %1357 = vmatmul.msk.bf16.vlgmr.msra.gmra.mxu2 %vm1356_vm5, %v1475_v34 }
0x1ad4   :  { %v1115_v46 = vpop.f32.mrf.mxu2 }
0x1ad5   :  { %v1116_v47 = vadd.f32 %v1115_v46, %v1102_v33 }
0x1ad7   :  { %v1119_v48 = vadd.f32 %v1722_v40, %v1116_v47 }
0x1ad9   :  { %1140 = vrot.lane.b32.xlu0 %v1119_v48, %s1476_s29  ;;  %v1358_v63 = vmul.f32 -1.442695, %v1119_v48 }
0x1adb   :  { %1460 = vpow2.f32 %v1358_v63 }
0x1adc   :  { %v1117_v49 = vpop.f32.mrf.mxu2 }
0x1ae1   :  { %v1461_v0 = vpop.eup %1460 }
0x1ae2   :  { %v1123_v50 = vadd.f32 1.0, %v1461_v0 }
0x1ae4   :  { %1462 = vrcp.f32 %v1123_v50  ;;  %v1135_v55 = vand.u32 2147483648, %v1123_v50  ;;  %vm1129_vm7 = vweird.f32 %v1123_v50  ;;  %v1133_v34 = vand.u32 2147483647, %v1123_v50 }
0x1ae6   :  { %v1136_v40 = vor.u32 1.1754944e-38, %v1135_v55  ;;  %vm1134_vm9 = vcmp.eq.f32.partialorder %v1133_v34, 8.507059e+37 }
0x1aea   :  { %v1463_v51 = vpop.eup %1462 }
0x1aeb   :  { %v1125_v52 = vmul.f32 %v1463_v51, %v1123_v50  ;;  %vm1130_vm6 = vweird.f32 %v1463_v51 }
0x1aec   :  { %vm1131_vm8 = vmor %vm1129_vm7, %vm1130_vm6 }
0x1aed   :  { %v1126_v53 = vsub.f32 1.0, %v1125_v52 }
0x1aef   :  { %v1127_v54 = vmul.f32 %v1463_v51, %v1126_v53 }
0x1af1   :  { %v1128_v36 = vadd.f32 %v1463_v51, %v1127_v54 }
0x1af3   :  { %v1132_v56 = vsel %vm1131_vm8, %v1463_v51, %v1128_v36 }
0x1af4   :  { %v1137_v58 = vsel %vm1134_vm9, %v1136_v40, %v1132_v56 }
0x1af5   :  { %v1150_v61 = vsub.f32 1.0, %v1137_v58  ;;  %v1156_v1 = vmul.f32 %v1137_v58, %v1897_v28 }
0x1b4b   :  { %v1141_v57 = vpop.permute.xlu0 %1140 }
0x1b4c   :  { %v1143_v38 = vmul.f32 %v1141_v57, %v1137_v58 }
0x1b4e   :  { %1145 = vrot.lane.b32.xlu2 %v1143_v38, %s1477_s8 }
0x1ba8   :  { %v1146_v59 = vpop.permute.xlu2 %1145 }
0x1ba9   :  { %v1148_v60 = vadd.f32 %v1146_v59, %v1119_v48 }
0x1bab   :  { %1464 = vtanh.f32 %v1148_v60 }
0x1bb1   :  { %v1465_v15 = vpop.eup %1464 }
0x1bb2   :  { %1152 = vrot.lane.b32.xlu1 %v1465_v15, %s1478_s30 }
0x1c24   :  { %v1153_v62 = vpop.permute.xlu1 %1152 }
0x1c25   :  { %v1155_v2 = vmul.f32 %v1153_v62, %v1150_v61 }
0x1c27   :  { %v1157_v3 = vadd.f32 %v1156_v1, %v1155_v2 }
0x1c29   :  { %v1158_v4 = vpack.c.bf16 %v1157_v3, %v1157_v3 }
0x1c2b   :  { %1160 = vrot.lane.b32.xlu0 %v1158_v4, %s1478_s30 }
0x1c9d   :  { %v1161_v5 = vpop.permute.xlu0 %1160 }
0x1c9e   :  { %1359 = vmatmul.msk.bf16.vlgmr.msra.gmra.mxu1 %vm365_vm0, %v1161_v5 }
0x1d1b   :  { %v1174_v7 = vpop.f32.mrf.mxu1 }
0x1d1c   :  { %v1175_v8 = vadd.f32 %v1777_v39, %v1174_v7 }
0x1d1e   :  { %1360 = vst [vmem:[%s1933_s11 + $0x38] sm:$0xff] %v1175_v8 }
0x1d23   :  { %v1176_v6 = vpop.f32.mrf.mxu1 }

</bundles_post_ra>
